<compile_context>
chip_gen: v5e
topology: v5e:2x2
jax: 0.10.0
libtpu: 0.0.40
codegen_flags: <defaults>
</compile_context>

<pallas_src>
import functools

import jax
import jax.numpy as jnp
import numpy as np
from jax.experimental import pallas as pl
from jax.experimental.pallas import tpu as pltpu


# --------------------------------------------------------------------------
# Host-side geometry helpers
# --------------------------------------------------------------------------

def _round_up(x, m):
    return ((x + m - 1) // m) * m


def _geom(B, H, W, k):
    p = k // 2
    Hp, Wp = H + 2 * p, W + 2 * p
    P = Hp * Wp                      # padded frame size per batch element
    j0 = p * Wp + p                  # flat offset of interior (h=0, w=0)
    L = (H - 1) * Wp + W             # conv-output span within one frame
    Ltot = (B - 1) * P + L           # span over the batch-concatenated frame
    return p, Hp, Wp, P, j0, L, Ltot


def _interior_mask(B, H, W, k):
    """(1, Ltot) f32 0/1 mask: 1 where the span position is a real (b, h, w) output."""
    _, _, Wp, P, _, _, Ltot = _geom(B, H, W, k)
    m = np.zeros((1, Ltot), np.float32)
    for b in range(B):
        for h in range(H):
            s = b * P + h * Wp
            m[0, s:s + W] = 1.0
    return jnp.asarray(m)


def _pool_select_matrix(B, H, W, k, pool, dtype):
    """(Mtot, B*Ho*Wo) 0/1 matrix picking the top-left corner of every pool window."""
    _, _, Wp, P, _, _, _ = _geom(B, H, W, k)
    Ho, Wo = H // pool, W // pool
    Mtot = (B - 1) * P + pool * (Ho - 1) * Wp + pool * (Wo - 1) + 1
    S = np.zeros((Mtot, B * Ho * Wo), np.float32)
    for b in range(B):
        for i in range(Ho):
            for j in range(Wo):
                S[b * P + pool * i * Wp + pool * j, b * Ho * Wo + i * Wo + j] = 1.0
    return jnp.asarray(S, dtype=dtype)


# --------------------------------------------------------------------------
# Fused Pallas kernel: conv0+ReLU -> [conv+BN+ReLU]* -> MaxPool, whole batch at once
# --------------------------------------------------------------------------

def _fused_encoder_kernel(*refs, depth, B, H, W, cin_p, cout_p, k, pool, eps, do_pool):
    p = k // 2
    Wp = W + 2 * p
    P = (H + 2 * p) * Wp
    j0 = p * Wp + p
    L = (H - 1) * Wp + W
    Ltot = (B - 1) * P + L

    nlr = 4 * (depth - 1)
    xp_ref, mask_ref, sel_ref, w0_ref, b0_ref = refs[:5]
    layer_refs = refs[5:5 + nlr]
    out_ref = refs[5 + nlr]
    frame_ref, im0_ref, im1_ref = refs[6 + nlr:]

    mdt = frame_ref.dtype
    mask = mask_ref[...]                                    # (1, Ltot) f32

    # ---- layer 0: conv (single stacked-K MXU matmul) + bias + ReLU ----------
    if k == 1:
        opnd0 = xp_ref[...]
    else:
        for kh in range(k):
            for kw in range(k):
                t = kh * k + kw
                off = kh * Wp + kw
                im0_ref[t * cin_p:(t + 1) * cin_p, :] = xp_ref[:, off:off + Ltot]
        opnd0 = im0_ref[...]
    y = jnp.dot(w0_ref[...], opnd0, preferred_element_type=jnp.float32)
    h = jnp.maximum(y + b0_ref[...], 0.0)                   # (cout_p, Ltot) f32

    n = float(B * H * W)
    if depth > 1 and k > 1:
        frame_ref[...] = jnp.zeros_like(frame_ref)          # zero border = conv padding

    # ---- layers 1..depth-1: conv + BatchNorm (batch stats) + ReLU -----------
    for d in range(1, depth):
        wd_ref, bd_ref, g_ref, be_ref = layer_refs[4 * (d - 1):4 * d]
        if k == 1:
            frame_ref[...] = (h * mask).astype(mdt)
            opnd = frame_ref[...]
        else:
            frame_ref[:, j0:j0 + Ltot] = (h * mask).astype(mdt)
            for kh in range(k):
                for kw in range(k):
                    t = kh * k + kw
                    off = kh * Wp + kw
                    im1_ref[t * cout_p:(t + 1) * cout_p, :] = frame_ref[:, off:off + Ltot]
            opnd = im1_ref[...]
        y = jnp.dot(wd_ref[...], opnd, preferred_element_type=jnp.float32) + bd_ref[...]
        # BatchNorm2d train-mode batch statistics (biased variance, centered two-pass)
        mean = jnp.sum(y * mask, axis=1, keepdims=True) / n
        cen = (y - mean) * mask
        var = jnp.sum(cen * cen, axis=1, keepdims=True) / n
        scale = g_ref[...] * jax.lax.rsqrt(var + eps)
        shift = be_ref[...] - mean * scale
        h = jnp.maximum(y * scale + shift, 0.0)              # BN FMA applied once

    # ---- MaxPool2d + compaction to a lane-dense (cout_p, B*Ho*Wo) slab ------
    if not do_pool:                                          # decoder: Ltot == B*H*W
        out_ref[...] = h.astype(out_ref.dtype)
    else:
        Ho, Wo = H // pool, W // pool
        Mtot = (B - 1) * P + pool * (Ho - 1) * Wp + pool * (Wo - 1) + 1
        m = None
        for a in range(pool):
            for c in range(pool):
                off = a * Wp + c
                v = h[:, off:off + Mtot]
                m = v if m is None else jnp.maximum(m, v)
        out_ref[...] = jnp.dot(m.astype(sel_ref.dtype), sel_ref[...],
                               preferred_element_type=jnp.float32).astype(out_ref.dtype)


# --------------------------------------------------------------------------
# Encoder forward (public wrapper, NCHW in / NCHW out)
# --------------------------------------------------------------------------

def encoder_forward(x_nchw, params, *, kernel_size, pool_size, eps=1e-5,
                    mxu_dtype=jnp.bfloat16):
    B, Cin, H, W = map(int, x_nchw.shape)
    k = int(kernel_size)
    pool = int(pool_size)
    decoder = (k == 1 and pool == 1)
    layer_params = params[:1] if decoder else list(params)
    depth = len(layer_params)
    Cout = int(layer_params[0]["w"].shape[0])
    do_pool = not decoder

    # Pad channels to sublane-tile granularity so every in-kernel scratch store is
    # tile-aligned (8 rows for 32-bit, 16 for bf16 packed layout).
    gran = 16 if jnp.dtype(mxu_dtype).itemsize < 4 else 8
    cin_p = _round_up(Cin, gran)
    cout_p = _round_up(Cout, gran)

    p, Hp, Wp, P, j0, L, Ltot = _geom(B, H, W, k)

    # Zero-pad spatially, pad channels, fold batch into the lane axis.
    xp = jnp.pad(x_nchw, ((0, 0), (0, cin_p - Cin), (p, p), (p, p)))
    xp = jnp.transpose(xp, (1, 0, 2, 3)).reshape(cin_p, B * P).astype(mxu_dtype)

    mask = _interior_mask(B, H, W, k)

    if do_pool:
        Ho, Wo = H // pool, W // pool
        sel = _pool_select_matrix(B, H, W, k, pool, mxu_dtype)   # 0/1 exact in bf16
        out_cols = B * Ho * Wo
    else:
        sel = jnp.zeros((8, 128), mxu_dtype)                     # unused dummy
        out_cols = B * H * W

    def prep_w(w, ci_p):
        """(Co, Ci, k, k) -> single (cout_p, k*k*ci_p) slab, column = tap*ci_p + ci."""
        co, ci = int(w.shape[0]), int(w.shape[1])
        w4 = jnp.transpose(w, (0, 2, 3, 1))                      # (Co, k, k, Ci)
        w4 = jnp.pad(w4, ((0, cout_p - co), (0, 0), (0, 0), (0, ci_p - ci)))
        return w4.reshape(cout_p, k * k * ci_p).astype(mxu_dtype)

    def col(v):
        v = jnp.pad(v.astype(jnp.float32), (0, cout_p - int(v.shape[0])))
        return v.reshape(cout_p, 1)

    inputs = [xp, mask, sel, prep_w(layer_params[0]["w"], cin_p), col(layer_params[0]["b"])]
    for d in range(1, depth):
        lp = layer_params[d]
        inputs += [prep_w(lp["w"], cout_p), col(lp["b"]), col(lp["gamma"]), col(lp["beta"])]

    c2 = lambda i: (0, 0)
    in_specs = [pl.BlockSpec(a.shape, c2) for a in inputs]
    out_spec = pl.BlockSpec((cout_p, out_cols), c2)

    scratch_shapes = [
        pltpu.VMEM((cout_p, B * P), mxu_dtype),           # zero-padded activation frame
        pltpu.VMEM((k * k * cin_p, Ltot), mxu_dtype),     # stacked conv operand, layer 0
        pltpu.VMEM((k * k * cout_p, Ltot), mxu_dtype),    # stacked conv operand, layers >= 1
    ]

    # Rough VMEM budget; only set an explicit limit when the scoped default would be
    # exceeded (large H*W).  TODO(synk): spatial row-block tiling above ~48 MiB for v7x.
    itm = jnp.dtype(mxu_dtype).itemsize
    vmem_est = (2 * sum(int(np.prod(a.shape)) * a.dtype.itemsize for a in inputs)
                + 2 * cout_p * out_cols * 4
                + cout_p * B * P * itm
                + k * k * (cin_p + cout_p) * Ltot * itm
                + (3 + 2 * depth) * cout_p * Ltot * 4)
    cp_kwargs = dict(dimension_semantics=("arbitrary",))
    if vmem_est > (16 << 20):
        cp_kwargs["vmem_limit_bytes"] = int(min(vmem_est + (4 << 20), 64 << 20))

    kern = functools.partial(
        _fused_encoder_kernel, depth=depth, B=B, H=H, W=W,
        cin_p=cin_p, cout_p=cout_p, k=k, pool=pool, eps=eps, do_pool=do_pool)

    out = pl.pallas_call(
        kern,
        out_shape=jax.ShapeDtypeStruct((cout_p, out_cols), jnp.float32),
        grid=(1,),
        in_specs=in_specs,
        out_specs=out_spec,
        scratch_shapes=scratch_shapes,
        compiler_params=pltpu.CompilerParams(**cp_kwargs),
    )(*inputs)

    if do_pool:
        out = out.reshape(cout_p, B, Ho, Wo)[:Cout]
    else:
        out = out.reshape(cout_p, B, H, W)[:Cout]
    return jnp.transpose(out, (1, 0, 2, 3))


# --------------------------------------------------------------------------
# Pure-JAX reference + parameter init + main
# --------------------------------------------------------------------------

def encoder_reference(x, params, *, kernel_size, pool_size, eps=1e-5):
    k = kernel_size
    p = k // 2
    decoder = (kernel_size == 1 and pool_size == 1)
    layers = params[:1] if decoder else params
    h = x
    for d, layer in enumerate(layers):
        y = jax.lax.conv_general_dilated(
            h, layer["w"], (1, 1), [(p, p), (p, p)],
            dimension_numbers=("NCHW", "OIHW", "NCHW"),
            precision=jax.lax.Precision.HIGHEST)
        y = y + layer["b"].reshape(1, -1, 1, 1)
        if (not decoder) and d > 0:
            mean = jnp.mean(y, axis=(0, 2, 3), keepdims=True)
            var = jnp.mean((y - mean) ** 2, axis=(0, 2, 3), keepdims=True)
            y = (y - mean) * jax.lax.rsqrt(var + eps)
            y = y * layer["gamma"].reshape(1, -1, 1, 1) + layer["beta"].reshape(1, -1, 1, 1)
        h = jnp.maximum(y, 0.0)
    if not decoder:
        h = jax.lax.reduce_window(
            h, -jnp.inf, jax.lax.max,
            (1, 1, pool_size, pool_size), (1, 1, pool_size, pool_size), "VALID")
    return h


def init_params(key, cin, cout, depth, k):
    """Deterministic synthetic parameters with torch Conv2d/BatchNorm2d shapes."""
    params = []
    for d in range(depth):
        ci = cin if d == 0 else cout
        key, k1, k2, k3, k4 = jax.random.split(key, 5)
        layer = {
            "w": jax.random.normal(k1, (cout, ci, k, k), jnp.float32) * 0.1,
            "b": jax.random.normal(k2, (cout,), jnp.float32) * 0.1,
        }
        if d > 0:
            layer["gamma"] = 1.0 + 0.1 * jax.random.normal(k3, (cout,), jnp.float32)
            layer["beta"] = 0.1 * jax.random.normal(k4, (cout,), jnp.float32)
        params.append(layer)
    return params


if __name__ == "__main__":
    in_channels, out_channels, depth, kernel_size, pool_size = 4, 8, 2, 3, 2
    B, H, W = 2, 16, 16

    key = jax.random.PRNGKey(0)
    kx, kp = jax.random.split(key)
    x = jax.random.normal(kx, (B, in_channels, H, W), jnp.float32)
    params = init_params(kp, in_channels, out_channels, depth, kernel_size)

    def run(xv, pv, ks, ps, dtype):
        fwd = jax.jit(functools.partial(encoder_forward, kernel_size=ks,
                                        pool_size=ps, mxu_dtype=dtype))
        return jax.block_until_ready(fwd(xv, pv))

    # main config (depth=2, k=3, pool=2): f32 MXU path vs pure-JAX reference
    out_f32 = run(x, params, kernel_size, pool_size, jnp.float32)
    ref = encoder_reference(x, params, kernel_size=kernel_size, pool_size=pool_size)
    assert out_f32.shape == (B, out_channels, H // pool_size, W // pool_size), out_f32.shape
    err = float(jnp.max(jnp.abs(out_f32 - ref)))
    assert err < 5e-2, f"f32 mismatch vs reference: {err}"

    # performance default: bf16 MXU operands + bf16 scratch, f32 accumulation / BN math
    out_bf16 = run(x, params, kernel_size, pool_size, jnp.bfloat16)
    assert bool(jnp.all(jnp.isfinite(out_bf16)))
    err16 = float(jnp.max(jnp.abs(out_bf16 - ref)))
    assert err16 < 1.5e-1, f"bf16 mismatch vs reference: {err16}"

    # decoder config (1x1 conv + ReLU, no pool)
    dec_params = init_params(kp, in_channels, out_channels, 1, 1)
    out_dec = run(x, dec_params, 1, 1, jnp.float32)
    ref_dec = encoder_reference(x, dec_params, kernel_size=1, pool_size=1)
    assert out_dec.shape == (B, out_channels, H, W), out_dec.shape
    assert float(jnp.max(jnp.abs(out_dec - ref_dec))) < 5e-2

    # depth=3 (exercises the in-kernel conv -> BN -> ReLU layer loop)
    p3 = init_params(kp, in_channels, out_channels, 3, kernel_size)
    out_d3 = run(x, p3, kernel_size, pool_size, jnp.float32)
    ref_d3 = encoder_reference(x, p3, kernel_size=kernel_size, pool_size=pool_size)
    assert float(jnp.max(jnp.abs(out_d3 - ref_d3))) < 5e-2

    print("KERNEL_OK")
</pallas_src>

<mosaic_0001>
module attributes {stable_mosaic.version = 11 : i64} {
  func.func @_fused_encoder_kernel(%arg0: i32, %arg1: memref<8x648xf32, #tpu.memory_space<vmem>>, %arg2: memref<1x610xf32, #tpu.memory_space<vmem>>, %arg3: memref<591x128xf32, #tpu.memory_space<vmem>>, %arg4: memref<8x72xf32, #tpu.memory_space<vmem>>, %arg5: memref<8x1xf32, #tpu.memory_space<vmem>>, %arg6: memref<8x72xf32, #tpu.memory_space<vmem>>, %arg7: memref<8x1xf32, #tpu.memory_space<vmem>>, %arg8: memref<8x1xf32, #tpu.memory_space<vmem>>, %arg9: memref<8x1xf32, #tpu.memory_space<vmem>>, %arg10: memref<8x128xf32, #tpu.memory_space<vmem>>, %arg11: memref<8x648xf32, #tpu.memory_space<vmem>>, %arg12: memref<72x610xf32, #tpu.memory_space<vmem>>, %arg13: memref<72x610xf32, #tpu.memory_space<vmem>>) attributes {dimension_semantics = [#tpu.dimension_semantics<arbitrary>], iteration_bounds = array<i64: 1>, scalar_prefetch = 0 : i64, scratch_operands = 3 : i64, tpu.core_type = #tpu.core_type<tc>, window_params = [{pipeline_mode = #tpu.pipeline_mode<synchronous>, transform_indices = @transform_0, window_bounds = array<i64: 8, 648>}, {pipeline_mode = #tpu.pipeline_mode<synchronous>, transform_indices = @transform_1, window_bounds = array<i64: 1, 610>}, {pipeline_mode = #tpu.pipeline_mode<synchronous>, transform_indices = @transform_2, window_bounds = array<i64: 591, 128>}, {pipeline_mode = #tpu.pipeline_mode<synchronous>, transform_indices = @transform_3, window_bounds = array<i64: 8, 72>}, {pipeline_mode = #tpu.pipeline_mode<synchronous>, transform_indices = @transform_4, window_bounds = array<i64: 8, 1>}, {pipeline_mode = #tpu.pipeline_mode<synchronous>, transform_indices = @transform_5, window_bounds = array<i64: 8, 72>}, {pipeline_mode = #tpu.pipeline_mode<synchronous>, transform_indices = @transform_6, window_bounds = array<i64: 8, 1>}, {pipeline_mode = #tpu.pipeline_mode<synchronous>, transform_indices = @transform_7, window_bounds = array<i64: 8, 1>}, {pipeline_mode = #tpu.pipeline_mode<synchronous>, transform_indices = @transform_8, window_bounds = array<i64: 8, 1>}, {pipeline_mode = #tpu.pipeline_mode<synchronous>, transform_indices = @transform_9, window_bounds = array<i64: 8, 128>}]} {
    %c0 = arith.constant 0 : index
    %c0_0 = arith.constant 0 : index
    %0 = vector.load %arg2[%c0, %c0_0] : memref<1x610xf32, #tpu.memory_space<vmem>>, vector<1x610xf32>
    %c0_1 = arith.constant 0 : index
    %c0_2 = arith.constant 0 : index
    %1 = vector.load %arg1[%c0_1, %c0_2] : memref<8x648xf32, #tpu.memory_space<vmem>>, vector<8x610xf32>
    %c0_3 = arith.constant 0 : index
    %c0_4 = arith.constant 0 : index
    %2 = vector.load %arg12[%c0_3, %c0_4] : memref<72x610xf32, #tpu.memory_space<vmem>>, vector<8x610xf32>
    tpu.vector_store %arg12[%c0_3, %c0_4], %1 {strides = array<i32>} : memref<72x610xf32, #tpu.memory_space<vmem>>, vector<8x610xf32>,
    %c0_5 = arith.constant 0 : index
    %c1 = arith.constant 1 : index
    %3 = vector.load %arg1[%c0_5, %c1] : memref<8x648xf32, #tpu.memory_space<vmem>>, vector<8x610xf32>
    %c8 = arith.constant 8 : index
    %c0_6 = arith.constant 0 : index
    %4 = vector.load %arg12[%c8, %c0_6] : memref<72x610xf32, #tpu.memory_space<vmem>>, vector<8x610xf32>
    tpu.vector_store %arg12[%c8, %c0_6], %3 {strides = array<i32>} : memref<72x610xf32, #tpu.memory_space<vmem>>, vector<8x610xf32>,
    %c0_7 = arith.constant 0 : index
    %c2 = arith.constant 2 : index
    %5 = vector.load %arg1[%c0_7, %c2] : memref<8x648xf32, #tpu.memory_space<vmem>>, vector<8x610xf32>
    %c16 = arith.constant 16 : index
    %c0_8 = arith.constant 0 : index
    %6 = vector.load %arg12[%c16, %c0_8] : memref<72x610xf32, #tpu.memory_space<vmem>>, vector<8x610xf32>
    tpu.vector_store %arg12[%c16, %c0_8], %5 {strides = array<i32>} : memref<72x610xf32, #tpu.memory_space<vmem>>, vector<8x610xf32>,
    %c0_9 = arith.constant 0 : index
    %c18 = arith.constant 18 : index
    %7 = vector.load %arg1[%c0_9, %c18] : memref<8x648xf32, #tpu.memory_space<vmem>>, vector<8x610xf32>
    %c24 = arith.constant 24 : index
    %c0_10 = arith.constant 0 : index
    %8 = vector.load %arg12[%c24, %c0_10] : memref<72x610xf32, #tpu.memory_space<vmem>>, vector<8x610xf32>
    tpu.vector_store %arg12[%c24, %c0_10], %7 {strides = array<i32>} : memref<72x610xf32, #tpu.memory_space<vmem>>, vector<8x610xf32>,
    %c0_11 = arith.constant 0 : index
    %c19 = arith.constant 19 : index
    %9 = vector.load %arg1[%c0_11, %c19] : memref<8x648xf32, #tpu.memory_space<vmem>>, vector<8x610xf32>
    %c32 = arith.constant 32 : index
    %c0_12 = arith.constant 0 : index
    %10 = vector.load %arg12[%c32, %c0_12] : memref<72x610xf32, #tpu.memory_space<vmem>>, vector<8x610xf32>
    tpu.vector_store %arg12[%c32, %c0_12], %9 {strides = array<i32>} : memref<72x610xf32, #tpu.memory_space<vmem>>, vector<8x610xf32>,
    %c0_13 = arith.constant 0 : index
    %c20 = arith.constant 20 : index
    %11 = vector.load %arg1[%c0_13, %c20] : memref<8x648xf32, #tpu.memory_space<vmem>>, vector<8x610xf32>
    %c40 = arith.constant 40 : index
    %c0_14 = arith.constant 0 : index
    %12 = vector.load %arg12[%c40, %c0_14] : memref<72x610xf32, #tpu.memory_space<vmem>>, vector<8x610xf32>
    tpu.vector_store %arg12[%c40, %c0_14], %11 {strides = array<i32>} : memref<72x610xf32, #tpu.memory_space<vmem>>, vector<8x610xf32>,
    %c0_15 = arith.constant 0 : index
    %c36 = arith.constant 36 : index
    %13 = vector.load %arg1[%c0_15, %c36] : memref<8x648xf32, #tpu.memory_space<vmem>>, vector<8x610xf32>
    %c48 = arith.constant 48 : index
    %c0_16 = arith.constant 0 : index
    %14 = vector.load %arg12[%c48, %c0_16] : memref<72x610xf32, #tpu.memory_space<vmem>>, vector<8x610xf32>
    tpu.vector_store %arg12[%c48, %c0_16], %13 {strides = array<i32>} : memref<72x610xf32, #tpu.memory_space<vmem>>, vector<8x610xf32>,
    %c0_17 = arith.constant 0 : index
    %c37 = arith.constant 37 : index
    %15 = vector.load %arg1[%c0_17, %c37] : memref<8x648xf32, #tpu.memory_space<vmem>>, vector<8x610xf32>
    %c56 = arith.constant 56 : index
    %c0_18 = arith.constant 0 : index
    %16 = vector.load %arg12[%c56, %c0_18] : memref<72x610xf32, #tpu.memory_space<vmem>>, vector<8x610xf32>
    tpu.vector_store %arg12[%c56, %c0_18], %15 {strides = array<i32>} : memref<72x610xf32, #tpu.memory_space<vmem>>, vector<8x610xf32>,
    %c0_19 = arith.constant 0 : index
    %c38 = arith.constant 38 : index
    %17 = vector.load %arg1[%c0_19, %c38] : memref<8x648xf32, #tpu.memory_space<vmem>>, vector<8x610xf32>
    %c64 = arith.constant 64 : index
    %c0_20 = arith.constant 0 : index
    %18 = vector.load %arg12[%c64, %c0_20] : memref<72x610xf32, #tpu.memory_space<vmem>>, vector<8x610xf32>
    tpu.vector_store %arg12[%c64, %c0_20], %17 {strides = array<i32>} : memref<72x610xf32, #tpu.memory_space<vmem>>, vector<8x610xf32>,
    %c0_21 = arith.constant 0 : index
    %c0_22 = arith.constant 0 : index
    %19 = vector.load %arg12[%c0_21, %c0_22] : memref<72x610xf32, #tpu.memory_space<vmem>>, vector<72x610xf32>
    %c0_23 = arith.constant 0 : index
    %c0_24 = arith.constant 0 : index
    %20 = vector.load %arg4[%c0_23, %c0_24] : memref<8x72xf32, #tpu.memory_space<vmem>>, vector<8x72xf32>
    %cst = arith.constant dense<0.000000e+00> : vector<8x610xf32>
    %21 = tpu.matmul %20, %19, %cst {dimension_numbers = #tpu.dot_dimension_numbers<[1], [0], [0], [1], [0, 0, 1, 1], [], []>} : vector<8x72xf32>, vector<72x610xf32>, vector<8x610xf32> -> vector<8x610xf32>
    %c0_25 = arith.constant 0 : index
    %c0_26 = arith.constant 0 : index
    %22 = vector.load %arg5[%c0_25, %c0_26] : memref<8x1xf32, #tpu.memory_space<vmem>>, vector<8x1xf32>
    %23 = vector.broadcast %22 : vector<8x1xf32> to vector<8x610xf32>
    %24 = arith.addf %21, %23 : vector<8x610xf32>
    %cst_27 = arith.constant 0.000000e+00 : f32
    %25 = vector.broadcast %cst_27 : f32 to vector<8x610xf32>
    %26 = arith.maximumf %24, %25 : vector<8x610xf32>
    %cst_28 = arith.constant 0.000000e+00 : f32
    %27 = vector.broadcast %cst_28 : f32 to vector<8x648xf32>
    %c0_29 = arith.constant 0 : index
    %c0_30 = arith.constant 0 : index
    %28 = vector.load %arg11[%c0_29, %c0_30] : memref<8x648xf32, #tpu.memory_space<vmem>>, vector<8x648xf32>
    tpu.vector_store %arg11[%c0_29, %c0_30], %27 {strides = array<i32>} : memref<8x648xf32, #tpu.memory_space<vmem>>, vector<8x648xf32>,
    %29 = vector.broadcast %0 : vector<1x610xf32> to vector<8x610xf32>
    %30 = arith.mulf %26, %29 : vector<8x610xf32>
    %c0_31 = arith.constant 0 : index
    %c19_32 = arith.constant 19 : index
    %31 = vector.load %arg11[%c0_31, %c19_32] : memref<8x648xf32, #tpu.memory_space<vmem>>, vector<8x610xf32>
    tpu.vector_store %arg11[%c0_31, %c19_32], %30 {strides = array<i32>} : memref<8x648xf32, #tpu.memory_space<vmem>>, vector<8x610xf32>,
    %c0_33 = arith.constant 0 : index
    %c0_34 = arith.constant 0 : index
    %32 = vector.load %arg11[%c0_33, %c0_34] : memref<8x648xf32, #tpu.memory_space<vmem>>, vector<8x610xf32>
    %c0_35 = arith.constant 0 : index
    %c0_36 = arith.constant 0 : index
    %33 = vector.load %arg13[%c0_35, %c0_36] : memref<72x610xf32, #tpu.memory_space<vmem>>, vector<8x610xf32>
    tpu.vector_store %arg13[%c0_35, %c0_36], %32 {strides = array<i32>} : memref<72x610xf32, #tpu.memory_space<vmem>>, vector<8x610xf32>,
    %c0_37 = arith.constant 0 : index
    %c1_38 = arith.constant 1 : index
    %34 = vector.load %arg11[%c0_37, %c1_38] : memref<8x648xf32, #tpu.memory_space<vmem>>, vector<8x610xf32>
    %c8_39 = arith.constant 8 : index
    %c0_40 = arith.constant 0 : index
    %35 = vector.load %arg13[%c8_39, %c0_40] : memref<72x610xf32, #tpu.memory_space<vmem>>, vector<8x610xf32>
    tpu.vector_store %arg13[%c8_39, %c0_40], %34 {strides = array<i32>} : memref<72x610xf32, #tpu.memory_space<vmem>>, vector<8x610xf32>,
    %c0_41 = arith.constant 0 : index
    %c2_42 = arith.constant 2 : index
    %36 = vector.load %arg11[%c0_41, %c2_42] : memref<8x648xf32, #tpu.memory_space<vmem>>, vector<8x610xf32>
    %c16_43 = arith.constant 16 : index
    %c0_44 = arith.constant 0 : index
    %37 = vector.load %arg13[%c16_43, %c0_44] : memref<72x610xf32, #tpu.memory_space<vmem>>, vector<8x610xf32>
    tpu.vector_store %arg13[%c16_43, %c0_44], %36 {strides = array<i32>} : memref<72x610xf32, #tpu.memory_space<vmem>>, vector<8x610xf32>,
    %c0_45 = arith.constant 0 : index
    %c18_46 = arith.constant 18 : index
    %38 = vector.load %arg11[%c0_45, %c18_46] : memref<8x648xf32, #tpu.memory_space<vmem>>, vector<8x610xf32>
    %c24_47 = arith.constant 24 : index
    %c0_48 = arith.constant 0 : index
    %39 = vector.load %arg13[%c24_47, %c0_48] : memref<72x610xf32, #tpu.memory_space<vmem>>, vector<8x610xf32>
    tpu.vector_store %arg13[%c24_47, %c0_48], %38 {strides = array<i32>} : memref<72x610xf32, #tpu.memory_space<vmem>>, vector<8x610xf32>,
    %c0_49 = arith.constant 0 : index
    %c19_50 = arith.constant 19 : index
    %40 = vector.load %arg11[%c0_49, %c19_50] : memref<8x648xf32, #tpu.memory_space<vmem>>, vector<8x610xf32>
    %c32_51 = arith.constant 32 : index
    %c0_52 = arith.constant 0 : index
    %41 = vector.load %arg13[%c32_51, %c0_52] : memref<72x610xf32, #tpu.memory_space<vmem>>, vector<8x610xf32>
    tpu.vector_store %arg13[%c32_51, %c0_52], %40 {strides = array<i32>} : memref<72x610xf32, #tpu.memory_space<vmem>>, vector<8x610xf32>,
    %c0_53 = arith.constant 0 : index
    %c20_54 = arith.constant 20 : index
    %42 = vector.load %arg11[%c0_53, %c20_54] : memref<8x648xf32, #tpu.memory_space<vmem>>, vector<8x610xf32>
    %c40_55 = arith.constant 40 : index
    %c0_56 = arith.constant 0 : index
    %43 = vector.load %arg13[%c40_55, %c0_56] : memref<72x610xf32, #tpu.memory_space<vmem>>, vector<8x610xf32>
    tpu.vector_store %arg13[%c40_55, %c0_56], %42 {strides = array<i32>} : memref<72x610xf32, #tpu.memory_space<vmem>>, vector<8x610xf32>,
    %c0_57 = arith.constant 0 : index
    %c36_58 = arith.constant 36 : index
    %44 = vector.load %arg11[%c0_57, %c36_58] : memref<8x648xf32, #tpu.memory_space<vmem>>, vector<8x610xf32>
    %c48_59 = arith.constant 48 : index
    %c0_60 = arith.constant 0 : index
    %45 = vector.load %arg13[%c48_59, %c0_60] : memref<72x610xf32, #tpu.memory_space<vmem>>, vector<8x610xf32>
    tpu.vector_store %arg13[%c48_59, %c0_60], %44 {strides = array<i32>} : memref<72x610xf32, #tpu.memory_space<vmem>>, vector<8x610xf32>,
    %c0_61 = arith.constant 0 : index
    %c37_62 = arith.constant 37 : index
    %46 = vector.load %arg11[%c0_61, %c37_62] : memref<8x648xf32, #tpu.memory_space<vmem>>, vector<8x610xf32>
    %c56_63 = arith.constant 56 : index
    %c0_64 = arith.constant 0 : index
    %47 = vector.load %arg13[%c56_63, %c0_64] : memref<72x610xf32, #tpu.memory_space<vmem>>, vector<8x610xf32>
    tpu.vector_store %arg13[%c56_63, %c0_64], %46 {strides = array<i32>} : memref<72x610xf32, #tpu.memory_space<vmem>>, vector<8x610xf32>,
    %c0_65 = arith.constant 0 : index
    %c38_66 = arith.constant 38 : index
    %48 = vector.load %arg11[%c0_65, %c38_66] : memref<8x648xf32, #tpu.memory_space<vmem>>, vector<8x610xf32>
    %c64_67 = arith.constant 64 : index
    %c0_68 = arith.constant 0 : index
    %49 = vector.load %arg13[%c64_67, %c0_68] : memref<72x610xf32, #tpu.memory_space<vmem>>, vector<8x610xf32>
    tpu.vector_store %arg13[%c64_67, %c0_68], %48 {strides = array<i32>} : memref<72x610xf32, #tpu.memory_space<vmem>>, vector<8x610xf32>,
    %c0_69 = arith.constant 0 : index
    %c0_70 = arith.constant 0 : index
    %50 = vector.load %arg13[%c0_69, %c0_70] : memref<72x610xf32, #tpu.memory_space<vmem>>, vector<72x610xf32>
    %c0_71 = arith.constant 0 : index
    %c0_72 = arith.constant 0 : index
    %51 = vector.load %arg6[%c0_71, %c0_72] : memref<8x72xf32, #tpu.memory_space<vmem>>, vector<8x72xf32>
    %cst_73 = arith.constant dense<0.000000e+00> : vector<8x610xf32>
    %52 = tpu.matmul %51, %50, %cst_73 {dimension_numbers = #tpu.dot_dimension_numbers<[1], [0], [0], [1], [0, 0, 1, 1], [], []>} : vector<8x72xf32>, vector<72x610xf32>, vector<8x610xf32> -> vector<8x610xf32>
    %c0_74 = arith.constant 0 : index
    %c0_75 = arith.constant 0 : index
    %53 = vector.load %arg7[%c0_74, %c0_75] : memref<8x1xf32, #tpu.memory_space<vmem>>, vector<8x1xf32>
    %54 = vector.broadcast %53 : vector<8x1xf32> to vector<8x610xf32>
    %55 = arith.addf %52, %54 : vector<8x610xf32>
    %56 = vector.broadcast %0 : vector<1x610xf32> to vector<8x610xf32>
    %57 = arith.mulf %55, %56 : vector<8x610xf32>
    %cst_76 = arith.constant dense<0.000000e+00> : vector<8xf32>
    %58 = vector.multi_reduction <add>, %57, %cst_76 [1] : vector<8x610xf32> to vector<8xf32>
    %59 = vector.shape_cast %58 : vector<8xf32> to vector<8x1xf32>
    %cst_77 = arith.constant 5.120000e+02 : f32
    %60 = vector.broadcast %cst_77 : f32 to vector<8x1xf32>
    %61 = arith.divf %59, %60 : vector<8x1xf32>
    %62 = vector.broadcast %61 : vector<8x1xf32> to vector<8x610xf32>
    %63 = arith.subf %55, %62 : vector<8x610xf32>
    %64 = vector.broadcast %0 : vector<1x610xf32> to vector<8x610xf32>
    %65 = arith.mulf %63, %64 : vector<8x610xf32>
    %66 = arith.mulf %65, %65 : vector<8x610xf32>
    %cst_78 = arith.constant dense<0.000000e+00> : vector<8xf32>
    %67 = vector.multi_reduction <add>, %66, %cst_78 [1] : vector<8x610xf32> to vector<8xf32>
    %68 = vector.shape_cast %67 : vector<8xf32> to vector<8x1xf32>
    %cst_79 = arith.constant 5.120000e+02 : f32
    %69 = vector.broadcast %cst_79 : f32 to vector<8x1xf32>
    %70 = arith.divf %68, %69 : vector<8x1xf32>
    %c0_80 = arith.constant 0 : index
    %c0_81 = arith.constant 0 : index
    %71 = vector.load %arg8[%c0_80, %c0_81] : memref<8x1xf32, #tpu.memory_space<vmem>>, vector<8x1xf32>
    %cst_82 = arith.constant 9.99999974E-6 : f32
    %72 = vector.broadcast %cst_82 : f32 to vector<8x1xf32>
    %73 = arith.addf %70, %72 : vector<8x1xf32>
    %74 = math.rsqrt %73 : vector<8x1xf32>
    %75 = arith.mulf %71, %74 : vector<8x1xf32>
    %c0_83 = arith.constant 0 : index
    %c0_84 = arith.constant 0 : index
    %76 = vector.load %arg9[%c0_83, %c0_84] : memref<8x1xf32, #tpu.memory_space<vmem>>, vector<8x1xf32>
    %77 = arith.mulf %61, %75 : vector<8x1xf32>
    %78 = arith.subf %76, %77 : vector<8x1xf32>
    %79 = vector.broadcast %75 : vector<8x1xf32> to vector<8x610xf32>
    %80 = arith.mulf %55, %79 : vector<8x610xf32>
    %81 = vector.broadcast %78 : vector<8x1xf32> to vector<8x610xf32>
    %82 = arith.addf %80, %81 : vector<8x610xf32>
    %cst_85 = arith.constant 0.000000e+00 : f32
    %83 = vector.broadcast %cst_85 : f32 to vector<8x610xf32>
    %84 = arith.maximumf %82, %83 : vector<8x610xf32>
    %85 = vector.extract_strided_slice %84 {offsets = [0, 0], sizes = [8, 591], strides = [1, 1]} : vector<8x610xf32> to vector<8x591xf32>
    %86 = vector.extract_strided_slice %84 {offsets = [0, 1], sizes = [8, 591], strides = [1, 1]} : vector<8x610xf32> to vector<8x591xf32>
    %87 = arith.maximumf %85, %86 : vector<8x591xf32>
    %88 = vector.extract_strided_slice %84 {offsets = [0, 18], sizes = [8, 591], strides = [1, 1]} : vector<8x610xf32> to vector<8x591xf32>
    %89 = arith.maximumf %87, %88 : vector<8x591xf32>
    %90 = vector.extract_strided_slice %84 {offsets = [0, 19], sizes = [8, 591], strides = [1, 1]} : vector<8x610xf32> to vector<8x591xf32>
    %91 = arith.maximumf %89, %90 : vector<8x591xf32>
    %c0_86 = arith.constant 0 : index
    %c0_87 = arith.constant 0 : index
    %92 = vector.load %arg3[%c0_86, %c0_87] : memref<591x128xf32, #tpu.memory_space<vmem>>, vector<591x128xf32>
    %cst_88 = arith.constant dense<0.000000e+00> : vector<8x128xf32>
    %93 = tpu.matmul %91, %92, %cst_88 {dimension_numbers = #tpu.dot_dimension_numbers<[1], [0], [0], [1], [0, 0, 1, 1], [], []>} : vector<8x591xf32>, vector<591x128xf32>, vector<8x128xf32> -> vector<8x128xf32>
    %c0_89 = arith.constant 0 : index
    %c0_90 = arith.constant 0 : index
    %94 = vector.load %arg10[%c0_89, %c0_90] : memref<8x128xf32, #tpu.memory_space<vmem>>, vector<8x128xf32>
    tpu.vector_store %arg10[%c0_89, %c0_90], %93 {strides = array<i32>} : memref<8x128xf32, #tpu.memory_space<vmem>>, vector<8x128xf32>,
    return
  }
  func.func @transform_0(%arg0: i32) -> (i32, i32) {
    %c0_i32 = arith.constant 0 : i32
    %c0_i32_0 = arith.constant 0 : i32
    %c0_i32_1 = arith.constant 0 : i32
    return %c0_i32, %c0_i32_0 : i32, i32
  }
  func.func @transform_1(%arg0: i32) -> (i32, i32) {
    %c0_i32 = arith.constant 0 : i32
    %c0_i32_0 = arith.constant 0 : i32
    %c0_i32_1 = arith.constant 0 : i32
    return %c0_i32, %c0_i32_0 : i32, i32
  }
  func.func @transform_2(%arg0: i32) -> (i32, i32) {
    %c0_i32 = arith.constant 0 : i32
    %c0_i32_0 = arith.constant 0 : i32
    %c0_i32_1 = arith.constant 0 : i32
    return %c0_i32, %c0_i32_0 : i32, i32
  }
  func.func @transform_3(%arg0: i32) -> (i32, i32) {
    %c0_i32 = arith.constant 0 : i32
    %c0_i32_0 = arith.constant 0 : i32
    %c0_i32_1 = arith.constant 0 : i32
    return %c0_i32, %c0_i32_0 : i32, i32
  }
  func.func @transform_4(%arg0: i32) -> (i32, i32) {
    %c0_i32 = arith.constant 0 : i32
    %c0_i32_0 = arith.constant 0 : i32
    %c0_i32_1 = arith.constant 0 : i32
    return %c0_i32, %c0_i32_0 : i32, i32
  }
  func.func @transform_5(%arg0: i32) -> (i32, i32) {
    %c0_i32 = arith.constant 0 : i32
    %c0_i32_0 = arith.constant 0 : i32
    %c0_i32_1 = arith.constant 0 : i32
    return %c0_i32, %c0_i32_0 : i32, i32
  }
  func.func @transform_6(%arg0: i32) -> (i32, i32) {
    %c0_i32 = arith.constant 0 : i32
    %c0_i32_0 = arith.constant 0 : i32
    %c0_i32_1 = arith.constant 0 : i32
    return %c0_i32, %c0_i32_0 : i32, i32
  }
  func.func @transform_7(%arg0: i32) -> (i32, i32) {
    %c0_i32 = arith.constant 0 : i32
    %c0_i32_0 = arith.constant 0 : i32
    %c0_i32_1 = arith.constant 0 : i32
    return %c0_i32, %c0_i32_0 : i32, i32
  }
  func.func @transform_8(%arg0: i32) -> (i32, i32) {
    %c0_i32 = arith.constant 0 : i32
    %c0_i32_0 = arith.constant 0 : i32
    %c0_i32_1 = arith.constant 0 : i32
    return %c0_i32, %c0_i32_0 : i32, i32
  }
  func.func @transform_9(%arg0: i32) -> (i32, i32) {
    %c0_i32 = arith.constant 0 : i32
    %c0_i32_0 = arith.constant 0 : i32
    %c0_i32_1 = arith.constant 0 : i32
    return %c0_i32, %c0_i32_0 : i32, i32
  }
}

</mosaic_0001>

<bundles_post_ra>
// kernel: encoder_forward.1
= control target key start
LH: loop header
LB: loop body
LE: loop exit
PB: predicated region body
PF: predicated region fallthrough
CT: control target
= control target key end

     0   :  { %s1406_s11 = smov 90   ;;  %s1407_s12 = smov 91   ;;  %vm243_vm0 = vcmask 752640   ;;  %vm323_vm1 = vcmask 736256   ;;  %vm283_vm2 = vcmask 744448   ;;  %vm204_vm3 = vcmask 883712   ;;  %s2198_s0 = inlined_call_operand.vmem [shape: f32[8,648], index: 0, kind: input, shape index: {}]   ;;  %s2199_s3 = inlined_call_operand.vmem [shape: f32[8,72], index: 3, kind: input, shape index: {}]   ;;  %s2200_s4 = inlined_call_operand.vmem [shape: f32[8,1], index: 4, kind: input, shape index: {}]   ;;  %s2201_s1 = inlined_call_operand.vmem [shape: f32[1,610], index: 1, kind: input, shape index: {}]   ;;  %s2202_s5 = inlined_call_operand.vmem [shape: f32[8,72], index: 5, kind: input, shape index: {}]   ;;  %s2203_s6 = inlined_call_operand.vmem [shape: f32[8,1], index: 6, kind: input, shape index: {}]   ;;  %s2204_s7 = inlined_call_operand.vmem [shape: f32[8,1], index: 7, kind: input, shape index: {}]   ;;  %s2205_s8 = inlined_call_operand.vmem [shape: f32[8,1], index: 8, kind: input, shape index: {}]   ;;  %s2206_s2 = inlined_call_operand.vmem [shape: f32[591,128], index: 2, kind: input, shape index: {}]   ;;  %s2207_s9 = inlined_call_operand.vmem [shape: f32[8,128], index: 9, kind: output, shape index: {}]  }
   0x1   :  { %v1471_v0 = vld [vmem:[%s2198_s0 + $0x10] sm:$0xff]  ;;  %v1480_v1 = vld [vmem:[%s2198_s0 + $0x18] sm:$0xff]  ;;  %s1408_s15 = smov 92   ;;  %v1491_v2 = vld [vmem:[%s2198_s0] sm:$0xff]  ;;  %s1409_s20 = smov 108   ;;  %vm42_vm4 = vcmask 801792  }
   0x2   :  { %315 = vrot.lane.b32.xlu0 %v1471_v0, %s1406_s11  ;;  %275 = vrot.lane.b32.xlu1 %v1471_v0, %s1407_s12  ;;  %v1498_v3 = vld [vmem:[%s2198_s0 + $0x8] sm:$0xff]  ;;  %s1410_s21 = smov 109   ;;  %v1509_v4 = vld [vmem:[%s2198_s0 + $0x20] sm:$0xff]  ;;  %s1411_s24 = smov 110   ;;  %vm169_vm5 = vcmask 891904   ;;  %vm134_vm6 = vcmask 900096  }
   0x3   :  { %235 = vrot.lane.b32.xlu2 %v1471_v0, %s1408_s15  ;;  %s1412_s25 = smov 126   ;;  %s1413_s26 = smov 127   ;;  %v304_v6 = vld [vmem:[%s2198_s0 + $0x28] sm:$0xff]  ;;  %43 = vst.msk [vmem:[#allocation3 + $0x20] sm:$0xff] %vm42_vm4, %v1509_v4  ;;  %vm99_vm7 = vcmask 1031168   ;;  %vm64_vm8 = vcmask 1039360  }
   0x4   :  { %v1631_v46 = vld [vmem:[%s2199_s3] sm:$0xff]  ;;  %vm391_vm9 = vcmask 588800   ;;  %v1414_v60 = vmov 0   ;;  %vm505_vm10 = vcmask 64512   ;;  %s1416_s13 = smov 19   ;;  %vm548_vm11 = vcmask 1047704  }
   0x5   :  { %v385_v59 = vld [vmem:[%s2200_s4] sm:$0xff]  ;;  %1379 = vset.pattern.permute.xlu1 %v1414_v60  ;;  %1380 = vset.pattern.permute.xlu2 %v1414_v60  ;;  %vm538_vm12 = vcmask 154624   ;;  %vm553_vm13 = vcmask 957440  }
   0x6   :  { %1401 = vset.pattern.permute.xlu0 %v1414_v60 }
   0xa   :  { %317 = vrot.lane.b32.xlu0 %v1480_v1, %s1406_s11  ;;  %277 = vrot.lane.b32.xlu1 %v1480_v1, %s1407_s12 }
   0xb   :  { %237 = vrot.lane.b32.xlu2 %v1480_v1, %s1408_s15 }
  0x12   :  { %200 = vrot.lane.b32.xlu1 %v1480_v1, %s1409_s20  ;;  %198 = vrot.lane.b32.xlu0 %v1471_v0, %s1409_s20 }
  0x13   :  { %163 = vrot.lane.b32.xlu2 %v1471_v0, %s1410_s21 }
  0x1a   :  { %319 = vrot.lane.b32.xlu1 %v1509_v4, %s1406_s11  ;;  %165 = vrot.lane.b32.xlu0 %v1480_v1, %s1410_s21 }
  0x1b   :  { %128 = vrot.lane.b32.xlu2 %v1471_v0, %s1411_s24 }
  0x22   :  { %279 = vrot.lane.b32.xlu1 %v1509_v4, %s1407_s12  ;;  %130 = vrot.lane.b32.xlu0 %v1480_v1, %s1411_s24 }
  0x23   :  { %93 = vrot.lane.b32.xlu2 %v1471_v0, %s1412_s25 }
  0x2a   :  { %239 = vrot.lane.b32.xlu1 %v1509_v4, %s1408_s15  ;;  %95 = vrot.lane.b32.xlu0 %v1480_v1, %s1412_s25 }
  0x2b   :  { %311 = vrot.lane.b32.xlu2 %v1491_v2, %s1406_s11 }
  0x32   :  { %313 = vrot.lane.b32.xlu0 %v1498_v3, %s1406_s11  ;;  %58 = vrot.lane.b32.xlu1 %v1471_v0, %s1413_s26 }
  0x33   :  { %60 = vrot.lane.b32.xlu2 %v1480_v1, %s1413_s26 }
  0x3a   :  { %202 = vrot.lane.b32.xlu0 %v1509_v4, %s1409_s20  ;;  %271 = vrot.lane.b32.xlu1 %v1491_v2, %s1407_s12 }
  0x3b   :  { %273 = vrot.lane.b32.xlu2 %v1498_v3, %s1407_s12 }
  0x42   :  { %167 = vrot.lane.b32.xlu0 %v1509_v4, %s1410_s21  ;;  %231 = vrot.lane.b32.xlu1 %v1491_v2, %s1408_s15 }
  0x43   :  { %233 = vrot.lane.b32.xlu2 %v1498_v3, %s1408_s15 }
  0x4a   :  { %132 = vrot.lane.b32.xlu0 %v1509_v4, %s1411_s24  ;;  %194 = vrot.lane.b32.xlu1 %v1491_v2, %s1409_s20 }
  0x4b   :  { %196 = vrot.lane.b32.xlu2 %v1498_v3, %s1409_s20 }
  0x52   :  { %97 = vrot.lane.b32.xlu0 %v1509_v4, %s1412_s25  ;;  %159 = vrot.lane.b32.xlu1 %v1491_v2, %s1410_s21 }
  0x53   :  { %161 = vrot.lane.b32.xlu2 %v1498_v3, %s1410_s21 }
  0x5a   :  { %62 = vrot.lane.b32.xlu0 %v1509_v4, %s1413_s26  ;;  %124 = vrot.lane.b32.xlu1 %v1491_v2, %s1411_s24 }
  0x5b   :  { %126 = vrot.lane.b32.xlu2 %v1498_v3, %s1411_s24 }
  0x5d   :  { %v236_v5 = vpop.permute.xlu2 %235 }
  0x62   :  { %321 = vrot.lane.b32.xlu0 %v304_v6, %s1406_s11  ;;  %89 = vrot.lane.b32.xlu1 %v1491_v2, %s1412_s25 }
  0x63   :  { %91 = vrot.lane.b32.xlu2 %v1498_v3, %s1412_s25 }
  0x65   :  { %v238_v7 = vpop.permute.xlu2 %237 }
  0x66   :  { %v246_v8 = vsel %vm243_vm0, %v236_v5, %v238_v7 }
  0x6a   :  { %281 = vrot.lane.b32.xlu0 %v304_v6, %s1407_s12  ;;  %54 = vrot.lane.b32.xlu1 %v1491_v2, %s1413_s26 }
  0x6b   :  { %56 = vrot.lane.b32.xlu2 %v1498_v3, %s1413_s26 }
  0x6d   :  { %v1579_v9 = vpop.permute.xlu2 %163 }
  0x72   :  { %241 = vrot.lane.b32.xlu0 %v304_v6, %s1408_s15  ;;  %388 = vperm.xlu1 %1379, %v385_v59  }
  0x74   :  { %v316_v10 = vpop.permute.xlu0 %315  ;;  %v276_v11 = vpop.permute.xlu1 %275 }
  0x75   :  { %v1582_v12 = vpop.permute.xlu2 %128 }
  0x7c   :  { %v318_v13 = vpop.permute.xlu0 %317  ;;  %v278_v14 = vpop.permute.xlu1 %277 }
  0x7d   :  { %v326_v15 = vsel %vm323_vm1, %v316_v10, %v318_v13  ;;  %v286_v16 = vsel %vm283_vm2, %v276_v11, %v278_v14  ;;  %v1586_v17 = vpop.permute.xlu2 %93 }
  0x7e   :  { %442 = vmatpush.msra.mxu3 %v326_v15 }
  0x80   :  { %443 = vmatpush.msra.mxu3 %v286_v16 }
  0x82   :  { %444 = vmatpush.msra.mxu3 %v246_v8 }
  0x84   :  { %v201_v18 = vpop.permute.xlu1 %200  ;;  %v199_v19 = vpop.permute.xlu0 %198 }
  0x85   :  { %v207_v20 = vsel %vm204_vm3, %v199_v19, %v201_v18  ;;  %v312_v21 = vpop.permute.xlu2 %311 }
  0x86   :  { %445 = vmatpush.msra.mxu3 %v207_v20 }
  0x8c   :  { %v1591_v22 = vpop.permute.xlu1 %319  ;;  %v166_v23 = vpop.permute.xlu0 %165 }
  0x8d   :  { %v327_v24 = vsel %vm323_vm1, %v318_v13, %v1591_v22  ;;  %v172_v25 = vsel %vm169_vm5, %v1579_v9, %v166_v23  ;;  %v1597_v26 = vpop.permute.xlu2 %60 }
  0x8e   :  { %446 = vmatpush.msra.mxu3 %v172_v25 }
  0x94   :  { %v1599_v27 = vpop.permute.xlu1 %279  ;;  %v1601_v28 = vpop.permute.xlu0 %130 }
  0x95   :  { %v287_v29 = vsel %vm283_vm2, %v278_v14, %v1599_v27  ;;  %v137_v30 = vsel %vm134_vm6, %v1582_v12, %v1601_v28  ;;  %v274_v31 = vpop.permute.xlu2 %273 }
  0x96   :  { %v285_v32 = vsel %vm283_vm2, %v274_v31, %v276_v11  ;;  %447 = vmatpush.msra.mxu3 %v137_v30 }
  0x9c   :  { %v1609_v33 = vpop.permute.xlu1 %239  ;;  %v1611_v34 = vpop.permute.xlu0 %95 }
  0x9d   :  { %v247_v35 = vsel %vm243_vm0, %v238_v7, %v1609_v33  ;;  %v102_v36 = vsel %vm99_vm7, %v1586_v17, %v1611_v34  ;;  %v234_v37 = vpop.permute.xlu2 %233 }
  0x9e   :  { %v245_v38 = vsel %vm243_vm0, %v234_v37, %v236_v5  ;;  %448 = vmatpush.msra.mxu3 %v102_v36 }
  0xa4   :  { %v314_v39 = vpop.permute.xlu0 %313  ;;  %v1619_v40 = vpop.permute.xlu1 %58 }
  0xa5   :  { %v324_v41 = vsel %vm323_vm1, %v312_v21, %v314_v39  ;;  %v325_v42 = vsel %vm323_vm1, %v314_v39, %v316_v10  ;;  %v197_v43 = vpop.permute.xlu2 %196  ;;  %v67_v44 = vsel %vm64_vm8, %v1619_v40, %v1597_v26  ;;  %v1415_v21 = vmov 0.0  }
  0xa6   :  { %v206_v45 = vsel %vm204_vm3, %v197_v43, %v199_v19  ;;  %402 = vmatpush.msra.mxu0 %v324_v41  ;;  %422 = vmatpush.msra.mxu1 %v325_v42  ;;  %506 = vst.msk [vmem:[#allocation2 + $0x28] sm:$0xff] %vm505_vm10, %v1415_v21 }
  0xa7   :  { %449 = vmatpush.msra.mxu3 %v67_v44  ;;  %500 = vst [vmem:[#allocation2] sm:$0xff] %v1415_v21 }
  0xa8   :  { %423 = vmatpush.msra.mxu1 %v285_v32  ;;  %504 = vst [vmem:[#allocation2 + $0x20] sm:$0xff] %v1415_v21 }
  0xa9   :  { %450 = vmatpush.msra.mxu3 %v1471_v0 }
  0xaa   :  { %424 = vmatpush.msra.mxu1 %v245_v38  ;;  %1357 = vmatmul.msk.f32.vlgmr.msra.gmra.mxu3 %vm391_vm9, %v1631_v46 }
  0xab   :  { %462 = vmatpush.msrb.mxu3 %v327_v24 }
  0xac   :  { %v203_v47 = vpop.permute.xlu0 %202  ;;  %v272_v48 = vpop.permute.xlu1 %271  ;;  %425 = vmatpush.msra.mxu1 %v206_v45 }
  0xad   :  { %463 = vmatpush.msrb.mxu3 %v287_v29  ;;  %v208_v49 = vsel %vm204_vm3, %v201_v18, %v203_v47  ;;  %218 = vst.msk [vmem:[#allocation3 + $0xe8] sm:$0xff] %vm42_vm4, %v203_v47  ;;  %v162_v50 = vpop.permute.xlu2 %161  ;;  %v284_v51 = vsel %vm283_vm2, %v272_v48, %v274_v31  ;;  %v818_v24 = vld [vmem:[#allocation2 + $0x28] sm:$0xff] }
  0xae   :  { %v171_v52 = vsel %vm169_vm5, %v162_v50, %v1579_v9  ;;  %403 = vmatpush.msra.mxu0 %v284_v51  ;;  %835 = vrot.lane.b32.xlu0 %v818_v24, %s1406_s11 }
  0xaf   :  { %464 = vmatpush.msrb.mxu3 %v247_v35  ;;  %426 = vmatpush.msra.mxu1 %v171_v52  ;;  %v32_v35 = vld [vmem:[%s2201_s1] sm:$0x1f] }
  0xb0   :  { %v1692_v38 = vperm.slane %v32_v35, 2  ;;  %v1698_v48 = vperm.slane %v32_v35, 0 }
  0xb1   :  { %465 = vmatpush.msrb.mxu3 %v208_v49 }
  0xb4   :  { %v168_v53 = vpop.permute.xlu0 %167  ;;  %v232_v54 = vpop.permute.xlu1 %231 }
  0xb5   :  { %v173_v55 = vsel %vm169_vm5, %v166_v23, %v168_v53  ;;  %183 = vst.msk [vmem:[#allocation3 + $0xc0] sm:$0xff] %vm42_vm4, %v168_v53  ;;  %v127_v56 = vpop.permute.xlu2 %126  ;;  %v244_v57 = vsel %vm243_vm0, %v232_v54, %v234_v37  ;;  %v1701_v54 = vperm.slane %v32_v35, 3 }
  0xb6   :  { %v136_v58 = vsel %vm134_vm6, %v127_v56, %v1582_v12  ;;  %404 = vmatpush.msra.mxu0 %v244_v57  ;;  %466 = vmatpush.msrb.mxu3 %v173_v55 }
  0xb7   :  { %427 = vmatpush.msra.mxu1 %v136_v58  ;;  %796 = vrot.lane.b32.xlu0 %v818_v24, %s1407_s12  ;;  %v1704_v58 = vperm.slane %v32_v35, 4 }
  0xbc   :  { %v133_v61 = vpop.permute.xlu0 %132  ;;  %v195_v62 = vpop.permute.xlu1 %194  ;;  %v363_v29 = vld [vmem:[#allocation3 + $0xc0] sm:$0xff] }
  0xbd   :  { %v138_v63 = vsel %vm134_vm6, %v1601_v28, %v133_v61  ;;  %148 = vst.msk [vmem:[#allocation3 + $0x98] sm:$0xff] %vm42_vm4, %v133_v61  ;;  %v92_v0 = vpop.permute.xlu2 %91  ;;  %v205_v4 = vsel %vm204_vm3, %v195_v62, %v197_v43  ;;  %v368_v28 = vld [vmem:[#allocation3 + $0xe8] sm:$0xff]  ;;  %v1695_v43 = vperm.slane %v32_v35, 1 }
  0xbe   :  { %v101_v5 = vsel %vm99_vm7, %v92_v0, %v1586_v17  ;;  %405 = vmatpush.msra.mxu0 %v205_v4  ;;  %467 = vmatpush.msrb.mxu3 %v138_v63 }
  0xbf   :  { %428 = vmatpush.msra.mxu1 %v101_v5  ;;  %757 = vrot.lane.b32.xlu0 %v818_v24, %s1408_s15 }
  0xc4   :  { %v98_v6 = vpop.permute.xlu0 %97  ;;  %v160_v7 = vpop.permute.xlu1 %159  ;;  %v358_v30 = vld [vmem:[#allocation3 + $0x98] sm:$0xff] }
  0xc5   :  { %v103_v8 = vsel %vm99_vm7, %v1611_v34, %v98_v6  ;;  %113 = vst.msk [vmem:[#allocation3 + $0x70] sm:$0xff] %vm42_vm4, %v98_v6  ;;  %v170_v9 = vsel %vm169_vm5, %v160_v7, %v162_v50  ;;  %v57_v10 = vpop.permute.xlu2 %56 }
  0xc6   :  { %v66_v11 = vsel %vm64_vm8, %v57_v10, %v1619_v40  ;;  %406 = vmatpush.msra.mxu0 %v170_v9  ;;  %468 = vmatpush.msrb.mxu3 %v103_v8 }
  0xc7   :  { %429 = vmatpush.msra.mxu1 %v66_v11 }
  0xc9   :  { %430 = vmatpush.msra.mxu1 %v1498_v3 }
  0xca   :  { %1356 = vmatmul.msk.f32.vlgmr.msra.gmra.mxu1 %vm391_vm9, %v1631_v46 }
  0xcc   :  { %v63_v12 = vpop.permute.xlu0 %62  ;;  %v125_v13 = vpop.permute.xlu1 %124  ;;  %v353_v31 = vld [vmem:[#allocation3 + $0x70] sm:$0xff] }
  0xcd   :  { %v68_v14 = vsel %vm64_vm8, %v1597_v26, %v63_v12  ;;  %78 = vst.msk [vmem:[#allocation3 + $0x48] sm:$0xff] %vm42_vm4, %v63_v12  ;;  %v135_v15 = vsel %vm134_vm6, %v125_v13, %v127_v56 }
  0xce   :  { %407 = vmatpush.msra.mxu0 %v135_v15  ;;  %469 = vmatpush.msrb.mxu3 %v68_v14 }
  0xd0   :  { %470 = vmatpush.msrb.mxu3 %v1480_v1 }
  0xd1   :  { %1358 = vmatmul.msk.f32.vlgmr.msrb.gmra.mxu3 %vm391_vm9, %v1631_v46 }
  0xd4   :  { %v322_v3 = vpop.permute.xlu0 %321  ;;  %v90_v16 = vpop.permute.xlu1 %89  ;;  %v348_v32 = vld [vmem:[#allocation3 + $0x48] sm:$0xff] }
  0xd5   :  { %v328_v17 = vsel %vm323_vm1, %v1591_v22, %v322_v3  ;;  %v100_v18 = vsel %vm99_vm7, %v90_v16, %v92_v0 }
  0xd6   :  { %338 = vst.msk [vmem:[#allocation3 + $0x160] sm:$0xff] %vm42_vm4, %v328_v17  ;;  %408 = vmatpush.msra.mxu0 %v100_v18 }
  0xdc   :  { %v282_v19 = vpop.permute.xlu0 %281  ;;  %v55_v20 = vpop.permute.xlu1 %54 }
  0xdd   :  { %v288_v1 = vsel %vm283_vm2, %v1599_v27, %v282_v19  ;;  %v65_v23 = vsel %vm64_vm8, %v55_v20, %v57_v10  ;;  %v383_v22 = vld [vmem:[#allocation3 + $0x160] sm:$0xff] }
  0xde   :  { %298 = vst.msk [vmem:[#allocation3 + $0x138] sm:$0xff] %vm42_vm4, %v288_v1  ;;  %409 = vmatpush.msra.mxu0 %v65_v23 }
  0xe0   :  { %410 = vmatpush.msra.mxu0 %v1491_v2 }
  0xe1   :  { %1355 = vmatmul.msk.f32.vlgmr.msra.gmra.mxu0 %vm391_vm9, %v1631_v46 }
  0xe2   :  { %482 = vmatpush.msrb.mxu0 %v383_v22 }
  0xe4   :  { %v242_v25 = vpop.permute.xlu0 %241  ;;  %v389_v34 = vpop.permute.xlu1 %388 }
  0xe5   :  { %v248_v26 = vsel %vm243_vm0, %v1609_v33, %v242_v25  ;;  %v378_v27 = vld [vmem:[#allocation3 + $0x138] sm:$0xff]  ;;  %v343_v33 = vld [vmem:[#allocation3 + $0x20] sm:$0xff] }
  0xe6   :  { %258 = vst.msk [vmem:[#allocation3 + $0x110] sm:$0xff] %vm42_vm4, %v248_v26  ;;  %483 = vmatpush.msrb.mxu0 %v378_v27 }
  0xed   :  { %v373_v2 = vld [vmem:[#allocation3 + $0x110] sm:$0xff] }
  0xee   :  { %484 = vmatpush.msrb.mxu0 %v373_v2 }
  0xf0   :  { %485 = vmatpush.msrb.mxu0 %v368_v28 }
  0xf2   :  { %486 = vmatpush.msrb.mxu0 %v363_v29 }
  0xf4   :  { %487 = vmatpush.msrb.mxu0 %v358_v30 }
  0xf6   :  { %488 = vmatpush.msrb.mxu0 %v353_v31 }
  0xf8   :  { %489 = vmatpush.msrb.mxu0 %v348_v32 }
  0xfa   :  { %490 = vmatpush.msrb.mxu0 %v343_v33 }
  0xfb   :  { %1359 = vmatmul.msk.f32.vlgmr.msrb.gmra.mxu0 %vm391_vm9, %v1631_v46 }
 0x120   :  { %v1707_v61 = vpop.permute.xlu0 %835 }
 0x129   :  { %v1709_v62 = vpop.permute.xlu0 %796 }
 0x12d   :  { %v452_v36 = vpop.f32.mrf.mxu3 }
 0x12e   :  { %v453_v37 = vadd.f32 %v452_v36, %v389_v34 }
 0x130   :  { %v497_v39 = vmax.f32 %v453_v37, 0.0 }
 0x131   :  { %v1711_v63 = vpop.permute.xlu0 %757 }
 0x132   :  { %v520_v40 = vmul.f32 %v1692_v38, %v497_v39 }
 0x134   :  { %532 = vrot.lane.b32.xlu1 %v520_v40, %s1416_s13 }
 0x147   :  { %v432_v41 = vpop.f32.mrf.mxu1 }
 0x148   :  { %v433_v42 = vadd.f32 %v432_v41, %v389_v34 }
 0x14a   :  { %v496_v44 = vmax.f32 %v433_v42, 0.0 }
 0x14c   :  { %v519_v45 = vmul.f32 %v1695_v43, %v496_v44 }
 0x14e   :  { %530 = vrot.lane.b32.xlu0 %v519_v45, %s1416_s13 }
 0x154   :  { %v472_v49 = vpop.f32.mrf.mxu3 }
 0x155   :  { %v473_v51 = vadd.f32 %v472_v49, %v389_v34 }
 0x157   :  { %v498_v53 = vmax.f32 %v473_v51, 0.0 }
 0x159   :  { %v521_v55 = vmul.f32 %v1701_v54, %v498_v53 }
 0x15e   :  { %v412_v46 = vpop.f32.mrf.mxu0 }
 0x15f   :  { %v413_v47 = vadd.f32 %v412_v46, %v389_v34 }
 0x161   :  { %v495_v50 = vmax.f32 %v413_v47, 0.0 }
 0x163   :  { %v518_v52 = vmul.f32 %v1698_v48, %v495_v50 }
 0x165   :  { %528 = vrot.lane.b32.xlu2 %v518_v52, %s1416_s13 }
 0x16d   :  { %534 = vrot.lane.b32.xlu2 %v521_v55, %s1416_s13 }
 0x178   :  { %v492_v56 = vpop.f32.mrf.mxu0 }
 0x179   :  { %v493_v57 = vadd.f32 %v492_v56, %v389_v34 }
 0x17b   :  { %v499_v59 = vmax.f32 %v493_v57, 0.0 }
 0x17d   :  { %v522_v60 = vmul.f32 %v1704_v58, %v499_v59 }
 0x17f   :  { %536 = vrot.lane.b32.xlu0 %v522_v60, %s1416_s13 }
 0x1a6   :  { %v533_v5 = vpop.permute.xlu1 %532 }
 0x1bf   :  { %v529_v0 = vpop.permute.xlu2 %528 }
 0x1c0   :  { %v531_v4 = vpop.permute.xlu0 %530  ;;  %549 = vst.msk [vmem:[#allocation2] sm:$0xff] %vm548_vm11, %v529_v0 }
 0x1c1   :  { %v1714_v6 = vsel %vm538_vm12, %v529_v0, %v531_v4  ;;  %v1717_v7 = vsel %vm538_vm12, %v531_v4, %v533_v5 }
 0x1c7   :  { %v535_v8 = vpop.permute.xlu2 %534  ;;  %v1719_v9 = vld [vmem:[#allocation2] sm:$0xff] }
 0x1c8   :  { %v1722_v10 = vsel %vm538_vm12, %v533_v5, %v535_v8  ;;  %825 = vrot.lane.b32.xlu0 %v1719_v9, %s1406_s11  ;;  %786 = vrot.lane.b32.xlu1 %v1719_v9, %s1407_s12 }
 0x1c9   :  { %747 = vrot.lane.b32.xlu2 %v1719_v9, %s1408_s15 }
 0x1d0   :  { %711 = vrot.lane.b32.xlu0 %v1719_v9, %s1409_s20  ;;  %827 = vrot.lane.b32.xlu1 %v1714_v6, %s1406_s11 }
 0x1d1   :  { %677 = vrot.lane.b32.xlu2 %v1719_v9, %s1410_s21 }
 0x1d8   :  { %575 = vrot.lane.b32.xlu0 %v1719_v9, %s1413_s26  ;;  %749 = vrot.lane.b32.xlu1 %v1714_v6, %s1408_s15 }
 0x1d9   :  { %643 = vrot.lane.b32.xlu2 %v1719_v9, %s1411_s24 }
 0x1e0   :  { %788 = vrot.lane.b32.xlu0 %v1714_v6, %s1407_s12  ;;  %645 = vrot.lane.b32.xlu1 %v1714_v6, %s1411_s24 }
 0x1e1   :  { %609 = vrot.lane.b32.xlu2 %v1719_v9, %s1412_s25 }
 0x1e8   :  { %679 = vrot.lane.b32.xlu0 %v1714_v6, %s1410_s21  ;;  %611 = vrot.lane.b32.xlu1 %v1714_v6, %s1412_s25 }
 0x1e9   :  { %713 = vrot.lane.b32.xlu2 %v1714_v6, %s1409_s20 }
 0x1f0   :  { %715 = vrot.lane.b32.xlu0 %v1717_v7, %s1409_s20  ;;  %577 = vrot.lane.b32.xlu1 %v1714_v6, %s1413_s26 }
 0x1f1   :  { %v537_v11 = vpop.permute.xlu0 %536  ;;  %829 = vrot.lane.b32.xlu2 %v1717_v7, %s1406_s11 }
 0x1f2   :  { %v542_v12 = vsel %vm538_vm12, %v535_v8, %v537_v11 }
 0x1f3   :  { %554 = vst.msk [vmem:[#allocation2 + $0x20] sm:$0xff] %vm553_vm13, %v542_v12 }
 0x1f8   :  { %790 = vrot.lane.b32.xlu1 %v1717_v7, %s1407_s12  ;;  %792 = vrot.lane.b32.xlu0 %v1722_v10, %s1407_s12 }
 0x1f9   :  { %751 = vrot.lane.b32.xlu2 %v1717_v7, %s1408_s15 }
 0x1fa   :  { %v817_v13 = vld [vmem:[#allocation2 + $0x20] sm:$0xff] }
 0x1fb   :  { %564 = vst.msk [vmem:[#allocation4 + $0x20] sm:$0xff] %vm42_vm4, %v817_v13 }
 0x200   :  { %681 = vrot.lane.b32.xlu1 %v1717_v7, %s1410_s21  ;;  %683 = vrot.lane.b32.xlu0 %v1722_v10, %s1410_s21 }
 0x201   :  { %647 = vrot.lane.b32.xlu2 %v1717_v7, %s1411_s24 }
 0x208   :  { %753 = vrot.lane.b32.xlu1 %v1722_v10, %s1408_s15  ;;  %649 = vrot.lane.b32.xlu0 %v1722_v10, %s1411_s24 }
 0x209   :  { %613 = vrot.lane.b32.xlu2 %v1717_v7, %s1412_s25 }
 0x210   :  { %833 = vrot.lane.b32.xlu1 %v817_v13, %s1406_s11  ;;  %615 = vrot.lane.b32.xlu0 %v1722_v10, %s1412_s25 }
 0x211   :  { %579 = vrot.lane.b32.xlu2 %v1717_v7, %s1413_s26 }
 0x218   :  { %794 = vrot.lane.b32.xlu1 %v817_v13, %s1407_s12  ;;  %617 = vrot.lane.b32.xlu0 %v817_v13, %s1412_s25 }
 0x219   :  { %831 = vrot.lane.b32.xlu2 %v1722_v10, %s1406_s11 }
 0x220   :  { %755 = vrot.lane.b32.xlu1 %v817_v13, %s1408_s15 }
 0x221   :  { %717 = vrot.lane.b32.xlu2 %v1722_v10, %s1409_s20 }
 0x223   :  { %v748_v14 = vpop.permute.xlu2 %747 }
 0x228   :  { %581 = vrot.lane.b32.xlu1 %v1722_v10, %s1413_s26 }
 0x229   :  { %719 = vrot.lane.b32.xlu2 %v817_v13, %s1409_s20 }
 0x22b   :  { %v678_v15 = vpop.permute.xlu2 %677 }
 0x230   :  { %685 = vrot.lane.b32.xlu1 %v817_v13, %s1410_s21 }
 0x231   :  { %651 = vrot.lane.b32.xlu2 %v817_v13, %s1411_s24 }
 0x233   :  { %v644_v3 = vpop.permute.xlu2 %643 }
 0x238   :  { %583 = vrot.lane.b32.xlu1 %v817_v13, %s1413_s26 }
 0x23a   :  { %v826_v16 = vpop.permute.xlu0 %825  ;;  %v787_v17 = vpop.permute.xlu1 %786 }
 0x23b   :  { %v610_v18 = vpop.permute.xlu2 %609 }
 0x242   :  { %v712_v19 = vpop.permute.xlu0 %711  ;;  %v828_v20 = vpop.permute.xlu1 %827 }
 0x243   :  { %v837_v21 = vsel %vm323_vm1, %v826_v16, %v828_v20  ;;  %v714_v1 = vpop.permute.xlu2 %713 }
 0x244   :  { %v721_v23 = vsel %vm204_vm3, %v712_v19, %v714_v1  ;;  %914 = vmatpush.msrb.mxu1 %v837_v21 }
 0x24a   :  { %v576_v22 = vpop.permute.xlu0 %575  ;;  %v750_v24 = vpop.permute.xlu1 %749 }
 0x24b   :  { %v759_v25 = vsel %vm243_vm0, %v748_v14, %v750_v24  ;;  %v830_v26 = vpop.permute.xlu2 %829 }
 0x24c   :  { %v838_v27 = vsel %vm323_vm1, %v828_v20, %v830_v26 }
 0x24d   :  { %934 = vmatpush.msra.mxu2 %v838_v27 }
 0x252   :  { %v789_v2 = vpop.permute.xlu0 %788  ;;  %v646_v28 = vpop.permute.xlu1 %645 }
 0x253   :  { %v798_v29 = vsel %vm283_vm2, %v787_v17, %v789_v2  ;;  %v653_v30 = vsel %vm134_vm6, %v644_v3, %v646_v28  ;;  %v752_v31 = vpop.permute.xlu2 %751 }
 0x254   :  { %v760_v32 = vsel %vm243_vm0, %v750_v24, %v752_v31  ;;  %915 = vmatpush.msrb.mxu1 %v798_v29 }
 0x256   :  { %916 = vmatpush.msrb.mxu1 %v759_v25 }
 0x258   :  { %917 = vmatpush.msrb.mxu1 %v721_v23  ;;  %v897_v23 = vld [vmem:[%s2202_s5] sm:$0xff] }
 0x25a   :  { %v680_v33 = vpop.permute.xlu0 %679  ;;  %v612_v34 = vpop.permute.xlu1 %611 }
 0x25b   :  { %v687_v35 = vsel %vm169_vm5, %v678_v15, %v680_v33  ;;  %v619_v36 = vsel %vm99_vm7, %v610_v18, %v612_v34  ;;  %v648_v37 = vpop.permute.xlu2 %647 }
 0x25c   :  { %v654_v39 = vsel %vm134_vm6, %v646_v28, %v648_v37  ;;  %918 = vmatpush.msrb.mxu1 %v687_v35 }
 0x25e   :  { %919 = vmatpush.msrb.mxu1 %v653_v30 }
 0x260   :  { %920 = vmatpush.msrb.mxu1 %v619_v36 }
 0x262   :  { %v716_v40 = vpop.permute.xlu0 %715  ;;  %v578_v41 = vpop.permute.xlu1 %577 }
 0x263   :  { %v722_v42 = vsel %vm204_vm3, %v714_v1, %v716_v40  ;;  %v585_v44 = vsel %vm64_vm8, %v576_v22, %v578_v41  ;;  %v614_v45 = vpop.permute.xlu2 %613 }
 0x264   :  { %v620_v46 = vsel %vm99_vm7, %v612_v34, %v614_v45  ;;  %921 = vmatpush.msrb.mxu1 %v585_v44 }
 0x266   :  { %922 = vmatpush.msrb.mxu1 %v1719_v9 }
 0x267   :  { %1360 = vmatmul.msk.f32.vlgmr.msrb.gmra.mxu1 %vm391_vm9, %v897_v23 }
 0x26a   :  { %v791_v47 = vpop.permute.xlu1 %790  ;;  %v793_v49 = vpop.permute.xlu0 %792 }
 0x26b   :  { %v799_v50 = vsel %vm283_vm2, %v789_v2, %v791_v47  ;;  %v800_v51 = vsel %vm283_vm2, %v791_v47, %v793_v49  ;;  %v1814_v52 = vpop.permute.xlu2 %579  ;;  %v898_v2 = vld [vmem:[%s2203_s6] sm:$0xff] }
 0x26c   :  { %v586_v53 = vsel %vm64_vm8, %v578_v41, %v1814_v52  ;;  %935 = vmatpush.msra.mxu2 %v799_v50  ;;  %901 = vperm.xlu2 %1380, %v898_v2  }
 0x26e   :  { %936 = vmatpush.msra.mxu2 %v760_v32 }
 0x270   :  { %937 = vmatpush.msra.mxu2 %v722_v42 }
 0x272   :  { %v682_v55 = vpop.permute.xlu1 %681  ;;  %v1818_v56 = vpop.permute.xlu0 %683 }
 0x273   :  { %v688_v57 = vsel %vm169_vm5, %v680_v33, %v682_v55  ;;  %v689_v59 = vsel %vm169_vm5, %v682_v55, %v1818_v56  ;;  %v832_v60 = vpop.permute.xlu2 %831 }
 0x274   :  { %v839_v0 = vsel %vm323_vm1, %v830_v26, %v832_v60  ;;  %938 = vmatpush.msra.mxu2 %v688_v57 }
 0x275   :  { %954 = vmatpush.msra.mxu3 %v839_v0 }
 0x276   :  { %939 = vmatpush.msra.mxu2 %v654_v39  ;;  %v856_v39 = vld [vmem:[#allocation4 + $0x20] sm:$0xff] }
 0x277   :  { %955 = vmatpush.msra.mxu3 %v800_v51 }
 0x278   :  { %940 = vmatpush.msra.mxu2 %v620_v46 }
 0x27a   :  { %v754_v4 = vpop.permute.xlu1 %753  ;;  %v650_v5 = vpop.permute.xlu0 %649  ;;  %941 = vmatpush.msra.mxu2 %v586_v53 }
 0x27b   :  { %v761_v8 = vsel %vm243_vm0, %v752_v31, %v754_v4  ;;  %v655_v9 = vsel %vm134_vm6, %v648_v37, %v650_v5  ;;  %v718_v11 = vpop.permute.xlu2 %717 }
 0x27c   :  { %v723_v12 = vsel %vm204_vm3, %v716_v40, %v718_v11  ;;  %942 = vmatpush.msra.mxu2 %v1714_v6  ;;  %956 = vmatpush.msra.mxu3 %v761_v8  ;;  %v1417_v8 = vmov 512.0  }
 0x27d   :  { %1361 = vmatmul.msk.f32.vlgmr.msra.gmra.mxu2 %vm391_vm9, %v897_v23  ;;  %1402 = vrcp.f32 %v1417_v8 }
 0x27e   :  { %957 = vmatpush.msra.mxu3 %v723_v12 }
 0x280   :  { %958 = vmatpush.msra.mxu3 %v689_v59 }
 0x282   :  { %v834_v13 = vpop.permute.xlu1 %833  ;;  %v616_v14 = vpop.permute.xlu0 %615  ;;  %959 = vmatpush.msra.mxu3 %v655_v9 }
 0x283   :  { %v840_v15 = vsel %vm323_vm1, %v832_v60, %v834_v13  ;;  %v841_v3 = vsel %vm323_vm1, %v834_v13, %v1707_v61  ;;  %v621_v16 = vsel %vm99_vm7, %v614_v45, %v616_v14  ;;  %v720_v17 = vpop.permute.xlu2 %719  ;;  %v1403_v9 = vpop.eup %1402 }
 0x284   :  { %v724_v18 = vsel %vm204_vm3, %v718_v11, %v720_v17  ;;  %960 = vmatpush.msra.mxu3 %v621_v16  ;;  %974 = vmatpush.msra.mxu0 %v840_v15  ;;  %851 = vst.msk [vmem:[#allocation4 + $0x160] sm:$0xff] %vm42_vm4, %v841_v3  ;;  %v1020_v11 = vmul.f32 512.0, %v1403_v9  ;;  %vm1024_vm14 = vweird.f32 %v1403_v9  ;;  %vm1242_vm3 = vcmask 646144  }
 0x285   :  { %734 = vst.msk [vmem:[#allocation4 + $0xe8] sm:$0xff] %vm42_vm4, %v720_v17 }
 0x286   :  { %v1021_v12 = vsub.f32 1.0, %v1020_v11  ;;  %v1182_v11 = vld [vmem:[%s2206_s2 + $0x70] sm:$0xff] }
 0x288   :  { %v1022_v13 = vmul.f32 %v1403_v9, %v1021_v12  ;;  %v1181_v12 = vld [vmem:[%s2206_s2 + $0x68] sm:$0xff] }
 0x28a   :  { %v795_v6 = vpop.permute.xlu1 %794  ;;  %v618_v19 = vpop.permute.xlu0 %617 }
 0x28b   :  { %v801_v20 = vsel %vm283_vm2, %v793_v49, %v795_v6  ;;  %v802_v21 = vsel %vm283_vm2, %v795_v6, %v1709_v62  ;;  %v622_v61 = vsel %vm99_vm7, %v616_v14, %v618_v19  ;;  %632 = vst.msk [vmem:[#allocation4 + $0x70] sm:$0xff] %vm42_vm4, %v618_v19  ;;  %v652_v1 = vpop.permute.xlu2 %651  ;;  %v896_v24 = vld [vmem:[#allocation4 + $0x160] sm:$0xff]  ;;  %v1023_v14 = vadd.f32 %v1403_v9, %v1022_v13  ;;  %v1197_v13 = vld [vmem:[%s2206_s2 + $0xe8] sm:$0xff] }
 0x28c   :  { %v656_v22 = vsel %vm134_vm6, %v650_v5, %v652_v1  ;;  %975 = vmatpush.msra.mxu0 %v801_v20  ;;  %812 = vst.msk [vmem:[#allocation4 + $0x138] sm:$0xff] %vm42_vm4, %v802_v21  ;;  %994 = vmatpush.msra.mxu1 %v896_v24  ;;  %v881_v31 = vld [vmem:[#allocation4 + $0xe8] sm:$0xff]  ;;  %vm1246_vm2 = vcmask 1046528  }
 0x28d   :  { %666 = vst.msk [vmem:[#allocation4 + $0x98] sm:$0xff] %vm42_vm4, %v652_v1  ;;  %v1025_v15 = vsel %vm1024_vm14, %v1403_v9, %v1023_v14  ;;  %v1180_v14 = vld [vmem:[%s2206_s2 + $0x60] sm:$0xff] }
 0x292   :  { %v756_v62 = vpop.permute.xlu1 %755  ;;  %v866_v36 = vld [vmem:[#allocation4 + $0x70] sm:$0xff] }
 0x293   :  { %v762_v25 = vsel %vm243_vm0, %v754_v4, %v756_v62  ;;  %v763_v26 = vsel %vm243_vm0, %v756_v62, %v1711_v63  ;;  %v891_v27 = vld [vmem:[#allocation4 + $0x138] sm:$0xff] }
 0x294   :  { %976 = vmatpush.msra.mxu0 %v762_v25  ;;  %773 = vst.msk [vmem:[#allocation4 + $0x110] sm:$0xff] %vm42_vm4, %v763_v26  ;;  %995 = vmatpush.msra.mxu1 %v891_v27 }
 0x296   :  { %977 = vmatpush.msra.mxu0 %v724_v18 }
 0x29a   :  { %v582_v28 = vpop.permute.xlu1 %581 }
 0x29b   :  { %v587_v29 = vsel %vm64_vm8, %v1814_v52, %v582_v28  ;;  %v886_v30 = vld [vmem:[#allocation4 + $0x110] sm:$0xff] }
 0x29c   :  { %961 = vmatpush.msra.mxu3 %v587_v29  ;;  %996 = vmatpush.msra.mxu1 %v886_v30 }
 0x29e   :  { %962 = vmatpush.msra.mxu3 %v1717_v7  ;;  %997 = vmatpush.msra.mxu1 %v881_v31  ;;  %v871_v7 = vld [vmem:[#allocation4 + $0x98] sm:$0xff] }
 0x29f   :  { %1362 = vmatmul.msk.f32.vlgmr.msra.gmra.mxu3 %vm391_vm9, %v897_v23 }
 0x2a2   :  { %v686_v63 = vpop.permute.xlu1 %685 }
 0x2a3   :  { %v690_v32 = vsel %vm169_vm5, %v1818_v56, %v686_v63  ;;  %700 = vst.msk [vmem:[#allocation4 + $0xc0] sm:$0xff] %vm42_vm4, %v686_v63 }
 0x2a4   :  { %978 = vmatpush.msra.mxu0 %v690_v32 }
 0x2a6   :  { %979 = vmatpush.msra.mxu0 %v656_v22 }
 0x2a8   :  { %980 = vmatpush.msra.mxu0 %v622_v61 }
 0x2aa   :  { %v584_v33 = vpop.permute.xlu1 %583  ;;  %v876_v34 = vld [vmem:[#allocation4 + $0xc0] sm:$0xff] }
 0x2ab   :  { %v588_v35 = vsel %vm64_vm8, %v582_v28, %v584_v33  ;;  %598 = vst.msk [vmem:[#allocation4 + $0x48] sm:$0xff] %vm42_vm4, %v584_v33  ;;  %998 = vmatpush.msra.mxu1 %v876_v34  ;;  %v1050_v34 = vld [vmem:[%s2204_s7] sm:$0xff] }
 0x2ac   :  { %981 = vmatpush.msra.mxu0 %v588_v35 }
 0x2ad   :  { %999 = vmatpush.msra.mxu1 %v871_v7 }
 0x2ae   :  { %982 = vmatpush.msra.mxu0 %v1722_v10 }
 0x2af   :  { %1000 = vmatpush.msra.mxu1 %v866_v36  ;;  %1363 = vmatmul.msk.f32.vlgmr.msra.gmra.mxu0 %vm391_vm9, %v897_v23 }
 0x2b2   :  { %v861_v37 = vld [vmem:[#allocation4 + $0x48] sm:$0xff] }
 0x2b3   :  { %1001 = vmatpush.msra.mxu1 %v861_v37 }
 0x2b5   :  { %1002 = vmatpush.msra.mxu1 %v856_v39  ;;  %v1063_v39 = vld [vmem:[%s2205_s8] sm:$0xff] }
 0x2b6   :  { %1364 = vmatmul.msk.f32.vlgmr.msra.gmra.mxu1 %vm391_vm9, %v897_v23 }
 0x2c6   :  { %v902_v40 = vpop.permute.xlu2 %901 }
 0x2e4   :  { %v924_v41 = vpop.f32.mrf.mxu1 }
 0x2e5   :  { %v1867_v44 = vadd.f32 %v924_v41, %v902_v40 }
 0x2e7   :  { %v1007_v10 = vmul.f32 %v1867_v44, %v1698_v48 }
 0x300   :  { %v944_v42 = vpop.f32.mrf.mxu2 }
 0x301   :  { %v1869_v45 = vadd.f32 %v944_v42, %v902_v40 }
 0x303   :  { %v1008_v49 = vmul.f32 %v1869_v45, %v1695_v43 }
 0x305   :  { %v1012_v53 = vadd.f32 %v1008_v49, %v1007_v10 }
 0x322   :  { %v964_v46 = vpop.f32.mrf.mxu3 }
 0x323   :  { %v1871_v47 = vadd.f32 %v964_v46, %v902_v40 }
 0x325   :  { %v1009_v51 = vmul.f32 %v1871_v47, %v1692_v38 }
 0x327   :  { %v1013_v57 = vadd.f32 %v1012_v53, %v1009_v51 }
 0x32c   :  { %v984_v50 = vpop.f32.mrf.mxu0 }
 0x32d   :  { %v1879_v52 = vadd.f32 %v984_v50, %v902_v40 }
 0x32f   :  { %v1010_v56 = vmul.f32 %v1879_v52, %v1701_v54 }
 0x331   :  { %v1014_v0 = vadd.f32 %v1013_v57, %v1010_v56 }
 0x333   :  { %v1004_v55 = vpop.f32.mrf.mxu1 }
 0x334   :  { %v1883_v59 = vadd.f32 %v1004_v55, %v902_v40 }
 0x336   :  { %v1011_v60 = vmul.f32 %v1883_v59, %v1704_v58 }
 0x338   :  { %v1015_v4 = vsel %vm42_vm4, %v1011_v60, 0.0 }
 0x339   :  { %v1016_v5 = vadd.f32 %v1015_v4, %v1014_v0  ;;  %v1183_v0 = vld [vmem:[%s2206_s2 + $0x78] sm:$0xff] }
 0x33a   :  { %v1199_v4 = vld [vmem:[%s2206_s2 + $0xf8] sm:$0xff]  ;;  %1250 = vmatpush.msrb.mxu2 %v1183_v0  ;;  %v1240_v0 = vld [vmem:[%s2206_s2 + $0x240] sm:$0xff] }
 0x33b   :  { %1017 = vadd.xlane.f32.xlu0 %v1016_v5  ;;  %1270 = vmatpush.msrb.mxu3 %v1199_v4  ;;  %v1201_v4 = vld [vmem:[%s2206_s2 + $0x108] sm:$0xff] }
 0x33c   :  { %1251 = vmatpush.msrb.mxu2 %v1182_v11  ;;  %v1238_v11 = vld [vmem:[%s2206_s2 + $0x230] sm:$0xff] }
 0x33e   :  { %1252 = vmatpush.msrb.mxu2 %v1181_v12  ;;  %v1223_v12 = vld [vmem:[%s2206_s2 + $0x1b8] sm:$0xff] }
 0x340   :  { %1253 = vmatpush.msrb.mxu2 %v1180_v14  ;;  %v1237_v14 = vld [vmem:[%s2206_s2 + $0x228] sm:$0xff] }
 0x3ae   :  { %v1018_v3 = vpop.xlane.xlu0 %1017 }
 0x3af   :  { %v1026_v16 = vmul.f32 %v1025_v15, %v1018_v3  ;;  %v1215_v3 = vld [vmem:[%s2206_s2 + $0x178] sm:$0xff] }
 0x3b0   :  { %1290 = vmatpush.msrb.mxu0 %v1215_v3  ;;  %v1236_v3 = vld [vmem:[%s2206_s2 + $0x220] sm:$0xff] }
 0x3b1   :  { %v1027_v17 = vsub.f32 %v1867_v44, %v1026_v16  ;;  %v1028_v18 = vsub.f32 %v1869_v45, %v1026_v16  ;;  %v1029_v6 = vsub.f32 %v1871_v47, %v1026_v16  ;;  %v1030_v19 = vsub.f32 %v1879_v52, %v1026_v16 }
 0x3b2   :  { %v1031_v20 = vsub.f32 %v1883_v59, %v1026_v16 }
 0x3b3   :  { %v1032_v21 = vmul.f32 %v1027_v17, %v1698_v48  ;;  %v1033_v61 = vmul.f32 %v1028_v18, %v1695_v43  ;;  %v1034_v1 = vmul.f32 %v1029_v6, %v1692_v38  ;;  %v1035_v22 = vmul.f32 %v1030_v19, %v1701_v54  ;;  %v1195_v17 = vld [vmem:[%s2206_s2 + $0xd8] sm:$0xff]  ;;  %v1214_v18 = vld [vmem:[%s2206_s2 + $0x170] sm:$0xff] }
 0x3b4   :  { %v1036_v23 = vmul.f32 %v1031_v20, %v1704_v58  ;;  %v1178_v6 = vld [vmem:[%s2206_s2 + $0x50] sm:$0xff]  ;;  %1291 = vmatpush.msrb.mxu0 %v1214_v18  ;;  %v1213_v20 = vld [vmem:[%s2206_s2 + $0x168] sm:$0xff]  ;;  %v1220_v18 = vld [vmem:[%s2206_s2 + $0x1a0] sm:$0xff] }
 0x3b5   :  { %v1037_v24 = vmul.f32 %v1032_v21, %v1032_v21  ;;  %v1038_v62 = vmul.f32 %v1033_v61, %v1033_v61  ;;  %v1039_v25 = vmul.f32 %v1034_v1, %v1034_v1  ;;  %v1040_v2 = vmul.f32 %v1035_v22, %v1035_v22  ;;  %v1194_v19 = vld [vmem:[%s2206_s2 + $0xd0] sm:$0xff]  ;;  %v1212_v21 = vld [vmem:[%s2206_s2 + $0x160] sm:$0xff]  ;;  %v1177_v61 = vld [vmem:[%s2206_s2 + $0x48] sm:$0xff] }
 0x3b6   :  { %v1041_v27 = vmul.f32 %v1036_v23, %v1036_v23  ;;  %v1193_v1 = vld [vmem:[%s2206_s2 + $0xc8] sm:$0xff]  ;;  %1292 = vmatpush.msrb.mxu0 %v1213_v20  ;;  %v1211_v23 = vld [vmem:[%s2206_s2 + $0x158] sm:$0xff]  ;;  %v1176_v22 = vld [vmem:[%s2206_s2 + $0x40] sm:$0xff] }
 0x3b7   :  { %v1042_v26 = vadd.f32 %v1038_v62, %v1037_v24  ;;  %v1192_v24 = vld [vmem:[%s2206_s2 + $0xc0] sm:$0xff]  ;;  %v1175_v62 = vld [vmem:[%s2206_s2 + $0x38] sm:$0xff] }
 0x3b8   :  { %v1045_v30 = vsel %vm42_vm4, %v1041_v27, 0.0  ;;  %1293 = vmatpush.msrb.mxu0 %v1212_v21  ;;  %v1190_v27 = vld [vmem:[%s2206_s2 + $0xb0] sm:$0xff]  ;;  %v1233_v21 = vld [vmem:[%s2206_s2 + $0x208] sm:$0xff] }
 0x3b9   :  { %v1043_v28 = vadd.f32 %v1042_v26, %v1039_v25  ;;  %v1191_v25 = vld [vmem:[%s2206_s2 + $0xb8] sm:$0xff]  ;;  %v1174_v26 = vld [vmem:[%s2206_s2 + $0x30] sm:$0xff] }
 0x3ba   :  { %1294 = vmatpush.msrb.mxu0 %v1211_v23 }
 0x3bb   :  { %v1044_v29 = vadd.f32 %v1043_v28, %v1040_v2  ;;  %v1210_v2 = vld [vmem:[%s2206_s2 + $0x150] sm:$0xff]  ;;  %v1173_v28 = vld [vmem:[%s2206_s2 + $0x28] sm:$0xff] }
 0x3bc   :  { %1295 = vmatpush.msrb.mxu0 %v1210_v2 }
 0x3bd   :  { %v1046_v31 = vadd.f32 %v1045_v30, %v1044_v29  ;;  %v1189_v29 = vld [vmem:[%s2206_s2 + $0xa8] sm:$0xff] }
 0x3be   :  { %v1209_v30 = vld [vmem:[%s2206_s2 + $0x148] sm:$0xff] }
 0x3bf   :  { %1047 = vadd.xlane.f32.xlu1 %v1046_v31  ;;  %v1208_v31 = vld [vmem:[%s2206_s2 + $0x140] sm:$0xff]  ;;  %1296 = vmatpush.msrb.mxu0 %v1209_v30 }
 0x3c1   :  { %1297 = vmatpush.msrb.mxu0 %v1208_v31 }
 0x432   :  { %v1048_v48 = vpop.xlane.xlu1 %1047 }
 0x433   :  { %v1049_v43 = vmul.f32 %v1048_v48, %v1025_v15  ;;  %v1196_v15 = vld [vmem:[%s2206_s2 + $0xe0] sm:$0xff] }
 0x434   :  { %v1172_v48 = vld [vmem:[%s2206_s2 + $0x20] sm:$0xff] }
 0x435   :  { %v1051_v63 = vadd.f32 1e-05, %v1049_v43  ;;  %v1188_v43 = vld [vmem:[%s2206_s2 + $0xa0] sm:$0xff] }
 0x437   :  { %1404 = vrsqrt.f32 %v1051_v63  ;;  %vm1058_vm0 = vweird.f32 %v1051_v63 }
 0x43d   :  { %v1405_v38 = vpop.eup %1404 }
 0x43e   :  { %v1053_v58 = vmul.f32 %v1405_v38, %v1051_v63  ;;  %vm1059_vm15 = vweird.f32 %v1405_v38  ;;  %v1231_v63 = vld [vmem:[%s2206_s2 + $0x1f8] sm:$0xff] }
 0x43f   :  { %vm1060_vm1 = vmor %vm1058_vm0, %vm1059_vm15  ;;  %1310 = vmatpush.msrb.mxu1 %v1231_v63 }
 0x440   :  { %v1054_v32 = vmul.f32 %v1405_v38, %v1053_v58  ;;  %v1230_v58 = vld [vmem:[%s2206_s2 + $0x1f0] sm:$0xff] }
 0x441   :  { %1311 = vmatpush.msrb.mxu1 %v1230_v58 }
 0x442   :  { %v1055_v54 = vmul.f32 0.5, %v1054_v32  ;;  %v1171_v32 = vld [vmem:[%s2206_s2 + $0x18] sm:$0xff] }
 0x444   :  { %v1056_v33 = vsub.f32 1.5, %v1055_v54  ;;  %v1187_v54 = vld [vmem:[%s2206_s2 + $0x98] sm:$0xff] }
 0x446   :  { %v1057_v35 = vmul.f32 %v1405_v38, %v1056_v33  ;;  %v1170_v33 = vld [vmem:[%s2206_s2 + $0x10] sm:$0xff] }
 0x448   :  { %v1061_v7 = vsel %vm1060_vm1, %v1405_v38, %v1057_v35  ;;  %v1207_v38 = vld [vmem:[%s2206_s2 + $0x138] sm:$0xff]  ;;  %v1206_v35 = vld [vmem:[%s2206_s2 + $0x130] sm:$0xff] }
 0x449   :  { %v1062_v36 = vmul.f32 %v1061_v7, %v1050_v34  ;;  %1298 = vmatpush.msrb.mxu0 %v1207_v38  ;;  %v1186_v34 = vld [vmem:[%s2206_s2 + $0x90] sm:$0xff]  ;;  %v1229_v7 = vld [vmem:[%s2206_s2 + $0x1e8] sm:$0xff] }
 0x44a   :  { %1312 = vmatpush.msrb.mxu1 %v1229_v7 }
 0x44b   :  { %1068 = vperm.xlu2 %1380, %v1062_v36   ;;  %v1064_v37 = vmul.f32 %v1062_v36, %v1026_v16  ;;  %v1179_v16 = vld [vmem:[%s2206_s2 + $0x58] sm:$0xff]  ;;  %v1169_v36 = vld [vmem:[%s2206_s2 + $0x8] sm:$0xff]  ;;  %1299 = vmatpush.msrb.mxu0 %v1206_v35 }
 0x44c   :  { %1254 = vmatpush.msrb.mxu2 %v1179_v16  ;;  %v1221_v16 = vld [vmem:[%s2206_s2 + $0x1a8] sm:$0xff] }
 0x44d   :  { %v1065_v40 = vsub.f32 %v1063_v39, %v1064_v37  ;;  %v1185_v37 = vld [vmem:[%s2206_s2 + $0x88] sm:$0xff] }
 0x44e   :  { %1255 = vmatpush.msrb.mxu2 %v1178_v6  ;;  %v1205_v39 = vld [vmem:[%s2206_s2 + $0x128] sm:$0xff]  ;;  %v1234_v6 = vld [vmem:[%s2206_s2 + $0x210] sm:$0xff] }
 0x44f   :  { %1300 = vmatpush.msrb.mxu0 %v1205_v39 }
 0x450   :  { %1256 = vmatpush.msrb.mxu2 %v1177_v61 }
 0x452   :  { %1257 = vmatpush.msrb.mxu2 %v1176_v22  ;;  %v1218_v22 = vld [vmem:[%s2206_s2 + $0x190] sm:$0xff] }
 0x453   :  { %1078 = vperm.xlu2 %1380, %v1065_v40   ;;  %v1228_v40 = vld [vmem:[%s2206_s2 + $0x1e0] sm:$0xff] }
 0x454   :  { %1258 = vmatpush.msrb.mxu2 %v1175_v62  ;;  %1313 = vmatpush.msrb.mxu1 %v1228_v40 }
 0x456   :  { %1259 = vmatpush.msrb.mxu2 %v1174_v26  ;;  %v1217_v26 = vld [vmem:[%s2206_s2 + $0x188] sm:$0xff] }
 0x458   :  { %1260 = vmatpush.msrb.mxu2 %v1173_v28  ;;  %v1216_v28 = vld [vmem:[%s2206_s2 + $0x180] sm:$0xff] }
 0x45a   :  { %1261 = vmatpush.msrb.mxu2 %v1172_v48 }
 0x45c   :  { %1262 = vmatpush.msrb.mxu2 %v1171_v32 }
 0x45e   :  { %1263 = vmatpush.msrb.mxu2 %v1170_v33 }
 0x460   :  { %1264 = vmatpush.msrb.mxu2 %v1169_v36 }
 0x4a5   :  { %v1069_v41 = vpop.permute.xlu2 %1068 }
 0x4a6   :  { %v1071_v42 = vmul.f32 %v1069_v41, %v1867_v44  ;;  %v1072_v46 = vmul.f32 %v1069_v41, %v1869_v45  ;;  %v1073_v10 = vmul.f32 %v1069_v41, %v1871_v47  ;;  %v1074_v55 = vmul.f32 %v1069_v41, %v1879_v52 }
 0x4a7   :  { %v1075_v5 = vmul.f32 %v1069_v41, %v1883_v59  ;;  %v1198_v59 = vld [vmem:[%s2206_s2 + $0xf0] sm:$0xff]  ;;  %v1168_v41 = vld [vmem:[%s2206_s2] sm:$0xff] }
 0x4a8   :  { %1271 = vmatpush.msrb.mxu3 %v1198_v59  ;;  %1265 = vmatpush.msrb.mxu2 %v1168_v41  ;;  %v1200_v59 = vld [vmem:[%s2206_s2 + $0x100] sm:$0xff] }
 0x4aa   :  { %1272 = vmatpush.msrb.mxu3 %v1197_v13 }
 0x4ac   :  { %1273 = vmatpush.msrb.mxu3 %v1196_v15  ;;  %v1222_v15 = vld [vmem:[%s2206_s2 + $0x1b0] sm:$0xff] }
 0x4ad   :  { %v1079_v49 = vpop.permute.xlu2 %1078 }
 0x4ae   :  { %v1908_v50 = vadd.f32 %v1079_v49, %v1071_v42  ;;  %v1910_v51 = vadd.f32 %v1079_v49, %v1072_v46  ;;  %v1083_v53 = vadd.f32 %v1079_v49, %v1073_v10  ;;  %v1084_v45 = vadd.f32 %v1079_v49, %v1074_v55  ;;  %1274 = vmatpush.msrb.mxu3 %v1195_v17  ;;  %v1184_v42 = vld [vmem:[%s2206_s2 + $0x80] sm:$0xff]  ;;  %v1227_v10 = vld [vmem:[%s2206_s2 + $0x1d8] sm:$0xff] }
 0x4af   :  { %v1085_v8 = vadd.f32 %v1079_v49, %v1075_v5  ;;  %v1204_v46 = vld [vmem:[%s2206_s2 + $0x120] sm:$0xff]  ;;  %v1203_v55 = vld [vmem:[%s2206_s2 + $0x118] sm:$0xff]  ;;  %1314 = vmatpush.msrb.mxu1 %v1227_v10 }
 0x4b0   :  { %v1086_v56 = vmax.f32 %v1908_v50, 0.0  ;;  %v1087_v57 = vmax.f32 %v1910_v51, 0.0  ;;  %v1915_v60 = vmax.f32 %v1083_v53, 0.0  ;;  %v1925_v47 = vmax.f32 %v1084_v45, 0.0  ;;  %1275 = vmatpush.msrb.mxu3 %v1194_v19  ;;  %v1241_v53 = vld [vmem:[%s2206_s2 + $0x248] sm:$0x7f]  ;;  %1301 = vmatpush.msrb.mxu0 %v1204_v46 }
 0x4b1   :  { %v1944_v9 = vmax.f32 %v1085_v8, 0.0  ;;  %1365 = vmatpush.msk.msra.mxu2 %vm1246_vm2, %v1241_v53  ;;  %v1202_v45 = vld [vmem:[%s2206_s2 + $0x110] sm:$0xff]  ;;  %v1224_v5 = vld [vmem:[%s2206_s2 + $0x1c0] sm:$0xff]  ;;  %v1239_v8 = vld [vmem:[%s2206_s2 + $0x238] sm:$0xff] }
 0x4b2   :  { %1148 = vrot.lane.b32.xlu1 %v1915_v60, %s1410_s21  ;;  %v1396_v44 = vpack.i.bf16 %v1087_v57, %v1086_v56  ;;  %v1386_v52 = vpack.i.bf16 %v1925_v47, %v1915_v60  ;;  %1276 = vmatpush.msrb.mxu3 %v1193_v1  ;;  %v1235_v17 = vld [vmem:[%s2206_s2 + $0x218] sm:$0xff] }
 0x4b3   :  { %1302 = vmatpush.msrb.mxu0 %v1203_v55  ;;  %1337 = vmatpush.msra.mxu2 %v1240_v0  ;;  %v1219_v19 = vld [vmem:[%s2206_s2 + $0x198] sm:$0xff] }
 0x4b4   :  { %1397 = vrot.lane.b32.xlu0 %v1396_v44, %s1410_s21  ;;  %1382 = vrot.lane.b32.xlu2 %v1396_v44, %s1413_s26 }
 0x4b5   :  { %1277 = vmatpush.msrb.mxu3 %v1192_v24  ;;  %1303 = vmatpush.msrb.mxu0 %v1202_v45  ;;  %v1232_v24 = vld [vmem:[%s2206_s2 + $0x200] sm:$0xff] }
 0x4b6   :  { %1338 = vmatpush.msra.mxu2 %v1239_v8 }
 0x4b7   :  { %1278 = vmatpush.msrb.mxu3 %v1191_v25  ;;  %1304 = vmatpush.msrb.mxu0 %v1201_v4 }
 0x4b8   :  { %1339 = vmatpush.msra.mxu2 %v1238_v11 }
 0x4b9   :  { %1279 = vmatpush.msrb.mxu3 %v1190_v27  ;;  %1305 = vmatpush.msrb.mxu0 %v1200_v59 }
 0x4ba   :  { %1150 = vrot.lane.b32.xlu1 %v1925_v47, %s1410_s21  ;;  %1340 = vmatpush.msra.mxu2 %v1237_v14 }
 0x4bb   :  { %1280 = vmatpush.msrb.mxu3 %v1189_v29 }
 0x4bc   :  { %1126 = vrot.lane.b32.xlu0 %v1925_v47, %s1411_s24  ;;  %1387 = vrot.lane.b32.xlu2 %v1386_v52, %s1413_s26  ;;  %v1225_v52 = vld [vmem:[%s2206_s2 + $0x1c8] sm:$0xff] }
 0x4bd   :  { %1281 = vmatpush.msrb.mxu3 %v1188_v43  ;;  %1341 = vmatpush.msra.mxu2 %v1236_v3 }
 0x4bf   :  { %1282 = vmatpush.msrb.mxu3 %v1187_v54  ;;  %1342 = vmatpush.msra.mxu2 %v1235_v17 }
 0x4c1   :  { %1283 = vmatpush.msrb.mxu3 %v1186_v34  ;;  %1343 = vmatpush.msra.mxu2 %v1234_v6 }
 0x4c3   :  { %1284 = vmatpush.msrb.mxu3 %v1185_v37  ;;  %1344 = vmatpush.msra.mxu2 %v1233_v21 }
 0x4c4   :  { %1392 = vrot.lane.b32.xlu2 %v1396_v44, %s1411_s24  ;;  %v1226_v44 = vld [vmem:[%s2206_s2 + $0x1d0] sm:$0xff] }
 0x4c5   :  { %1285 = vmatpush.msrb.mxu3 %v1184_v42  ;;  %1315 = vmatpush.msrb.mxu1 %v1226_v44 }
 0x4c6   :  { %1345 = vmatpush.msra.mxu2 %v1232_v24 }
 0x4c7   :  { %1316 = vmatpush.msrb.mxu1 %v1225_v52 }
 0x4c9   :  { %1317 = vmatpush.msrb.mxu1 %v1224_v5 }
 0x4cb   :  { %1318 = vmatpush.msrb.mxu1 %v1223_v12 }
 0x4cc   :  { %1124 = vrot.lane.b32.xlu2 %v1915_v60, %s1411_s24 }
 0x4cd   :  { %1319 = vmatpush.msrb.mxu1 %v1222_v15 }
 0x4cf   :  { %1320 = vmatpush.msrb.mxu1 %v1221_v16 }
 0x4d1   :  { %1321 = vmatpush.msrb.mxu1 %v1220_v18 }
 0x4d3   :  { %1322 = vmatpush.msrb.mxu1 %v1219_v19 }
 0x4d4   :  { %1104 = vrot.lane.b32.xlu2 %v1944_v9, %s1413_s26 }
 0x4d5   :  { %1323 = vmatpush.msrb.mxu1 %v1218_v22 }
 0x4d7   :  { %1324 = vmatpush.msrb.mxu1 %v1217_v26 }
 0x4d9   :  { %1325 = vmatpush.msrb.mxu1 %v1216_v28 }
 0x4dc   :  { %1128 = vrot.lane.b32.xlu2 %v1944_v9, %s1411_s24 }
 0x4e4   :  { %1152 = vrot.lane.b32.xlu2 %v1944_v9, %s1410_s21 }
 0x50e   :  { %v2093_v49 = vpop.permute.xlu2 %1382 }
 0x50f   :  { %v1385_v61 = vunpack.i.h.bf16 %v2093_v49  ;;  %v1384_v1 = vunpack.i.l.bf16 %v2093_v49 }
 0x511   :  { %v1106_v27 = vsel %vm64_vm8, %v1384_v1, %v1385_v61 }
 0x512   :  { %v1115_v31 = vmax.f32 %v1086_v56, %v1106_v27 }
 0x516   :  { %v2131_v13 = vpop.permute.xlu2 %1387 }
 0x517   :  { %v1389_v23 = vunpack.i.l.bf16 %v2131_v13  ;;  %v1390_v38 = vunpack.i.h.bf16 %v2131_v13 }
 0x519   :  { %v1107_v2 = vsel %vm64_vm8, %v1385_v61, %v1389_v23  ;;  %v1108_v36 = vsel %vm64_vm8, %v1389_v23, %v1390_v38 }
 0x51a   :  { %v1116_v63 = vmax.f32 %v1087_v57, %v1107_v2  ;;  %v1117_v37 = vmax.f32 %v1915_v60, %v1108_v36 }
 0x51e   :  { %v1393_v20 = vpop.permute.xlu2 %1392 }
 0x51f   :  { %v1395_v62 = vunpack.i.h.bf16 %v1393_v20  ;;  %v1394_v25 = vunpack.i.l.bf16 %v1393_v20 }
 0x521   :  { %v1130_v30 = vsel %vm134_vm6, %v1394_v25, %v1395_v62 }
 0x522   :  { %v1139_v34 = vmax.f32 %v1115_v31, %v1130_v30 }
 0x524   :  { %v1149_v29 = vpop.permute.xlu1 %1148 }
 0x526   :  { %v1398_v48 = vpop.permute.xlu0 %1397  ;;  %v1125_v43 = vpop.permute.xlu2 %1124 }
 0x527   :  { %v1400_v58 = vunpack.i.h.bf16 %v1398_v48  ;;  %v1399_v32 = vunpack.i.l.bf16 %v1398_v48  ;;  %v1131_v54 = vsel %vm134_vm6, %v1395_v62, %v1125_v43 }
 0x528   :  { %v1140_v33 = vmax.f32 %v1116_v63, %v1131_v54 }
 0x529   :  { %v1155_v35 = vsel %vm169_vm5, %v1400_v58, %v1149_v29  ;;  %v1154_v7 = vsel %vm169_vm5, %v1399_v32, %v1400_v58 }
 0x52a   :  { %v1164_v50 = vmax.f32 %v1140_v33, %v1155_v35  ;;  %v1163_v56 = vmax.f32 %v1139_v34, %v1154_v7 }
 0x52c   :  { %1266 = vmatmul.f32.vlgmr.msrb.gmra.mxu2 %v1163_v56  ;;  %1286 = vmatmul.f32.vlgmr.msrb.gmra.mxu3 %v1164_v50  ;;  %v1151_v51 = vpop.permute.xlu1 %1150 }
 0x52d   :  { %v1156_v42 = vsel %vm169_vm5, %v1149_v29, %v1151_v51 }
 0x52e   :  { %v1127_v57 = vpop.permute.xlu0 %1126  ;;  %v1105_v39 = vpop.permute.xlu2 %1104 }
 0x52f   :  { %v1132_v40 = vsel %vm134_vm6, %v1125_v43, %v1127_v57  ;;  %v1109_v49 = vsel %vm64_vm8, %v1390_v38, %v1105_v39  ;;  %v1119_v53 = vmax.f32 %v1944_v9, %v1105_v39 }
 0x530   :  { %v1141_v41 = vmax.f32 %v1117_v37, %v1132_v40  ;;  %v1118_v44 = vmax.f32 %v1925_v47, %v1109_v49 }
 0x532   :  { %v1165_v46 = vmax.f32 %v1141_v41, %v1156_v42 }
 0x534   :  { %1306 = vmatmul.f32.vlgmr.msrb.gmra.mxu0 %v1165_v46 }
 0x536   :  { %v1129_v10 = vpop.permute.xlu2 %1128 }
 0x537   :  { %v1133_v55 = vsel %vm134_vm6, %v1127_v57, %v1129_v10  ;;  %v1143_v45 = vmax.f32 %v1119_v53, %v1129_v10 }
 0x538   :  { %v1142_v52 = vmax.f32 %v1118_v44, %v1133_v55 }
 0x53e   :  { %v1153_v60 = vpop.permute.xlu2 %1152 }
 0x53f   :  { %v1157_v0 = vsel %vm169_vm5, %v1151_v51, %v1153_v60  ;;  %v1167_v4 = vmax.f32 %v1143_v45, %v1153_v60 }
 0x540   :  { %v1166_v5 = vmax.f32 %v1142_v52, %v1157_v0 }
 0x541   :  { %1366 = vmatmul.msk.f32.vlgmr.msra.gmra.mxu2 %vm1242_vm3, %v1167_v4 }
 0x542   :  { %1326 = vmatmul.f32.vlgmr.msrb.gmra.mxu1 %v1166_v5 }
 0x5af   :  { %v1267_v8 = vpop.f32.mrf.mxu2  ;;  %v1287_v11 = vpop.f32.mrf.mxu3 }
 0x5b0   :  { %v1288_v59 = vadd.f32 %v1287_v11, %v1267_v8 }
 0x5b1   :  { %v1307_v12 = vpop.f32.mrf.mxu0 }
 0x5b2   :  { %v1308_v9 = vadd.f32 %v1307_v12, %v1288_v59 }
 0x5bf   :  { %v1327_v13 = vpop.f32.mrf.mxu1 }
 0x5c0   :  { %v1328_v14 = vadd.f32 %v1327_v13, %v1308_v9 }
 0x5c4   :  { %v1347_v15 = vpop.f32.mrf.mxu2 }
 0x5c5   :  { %v1348_v3 = vadd.f32 %v1347_v15, %v1328_v14 }
 0x5c7   :  { %1350 = vst [vmem:[%s2207_s9] sm:$0xff] %v1348_v3 }

</bundles_post_ra>
